<compile_context>
chip_gen: v7x
topology: tpu7x:2x2x1
jax: 0.10.0
libtpu: 0.0.40
codegen_flags: <defaults>
</compile_context>

<pallas_src>
import math

import jax
import jax.numpy as jnp
from jax.experimental import pallas as pl
from jax.experimental.pallas import tpu as pltpu

# ----- module config (reference defaults, small image) ------------------------
PATCH = 16
CHANNELS = 3
LATENT = 768
IN_DIM = PATCH * PATCH * CHANNELS          # 768 (lane-aligned: 6 * 128)
IMG_H = IMG_W = 28                         # exercises the padding branch (28 -> 32)


# --------------------------------- kernel -------------------------------------
def input_embedding_kernel(x_ref, wt_ref, b_ref, cls_ref, pos_ref, o_ref):
    """Fused: linear projection + class-token splice + pos-embedding add.

    x_ref   : (TOK_PAD, IN_DIM) f32. Row 0 is zeros (class-token slot), rows
              1..n hold the flattened patches, trailing rows are zero padding.
    wt_ref  : (IN_DIM, LATENT)  pre-transposed nn.Linear weight (w.T).
    b_ref   : (1, LATENT)       nn.Linear bias.
    cls_ref : (1, LATENT)       class token.
    pos_ref : (1, LATENT)       positional embedding (broadcast to every token).
    o_ref   : (TOK_PAD, LATENT)
    """
    pos = pos_ref[...]                                       # (1, LATENT)
    proj = jnp.dot(x_ref[...], wt_ref[...],
                   preferred_element_type=jnp.float32)
    proj = proj + (b_ref[...] + pos)                         # bias + pos, broadcast
    row = jax.lax.broadcasted_iota(jnp.int32, proj.shape, 0)
    # Row 0 <- class token + pos (replaces the projected zero-row).
    o_ref[...] = jnp.where(row == 0, cls_ref[...] + pos, proj)


# ------------------------------- wrapper ---------------------------------------
def _patchify(img):
    """einops 'c (h h1) (w w1) -> (h w) (h1 w1 c)' with h1 = w1 = PATCH."""
    c, h, w = img.shape
    nh, nw = h // PATCH, w // PATCH
    p = img.reshape(c, nh, PATCH, nw, PATCH)
    p = p.transpose(1, 3, 2, 4, 0)                           # (h, w, h1, w1, c)
    return p.reshape(nh * nw, PATCH * PATCH * c)


@jax.jit
def input_embedding_forward(params, input_data):
    # input_data: (1, C, H, W) -- the reference forward does .squeeze(0)
    img = input_data[0].astype(jnp.float32)
    c, h, w = img.shape
    pad_h = (PATCH - h % PATCH) % PATCH
    pad_w = (PATCH - w % PATCH) % PATCH
    if pad_h or pad_w:
        img = jnp.pad(img, ((0, 0), (0, pad_h), (0, pad_w)))
    patches = _patchify(img)                                 # (n, IN_DIM)
    n = patches.shape[0]
    n_tok = n + 1
    tok_pad = max(8, -(-n_tok // 8) * 8)                     # 8-sublane alignment

    # Row 0 reserved for the class token (filled in-kernel); trailing rows are
    # zero padding sliced off after the call. Pure concat -> no scatter op.
    x = jnp.concatenate(
        [jnp.zeros((1, IN_DIM), jnp.float32),
         patches,
         jnp.zeros((tok_pad - n_tok, IN_DIM), jnp.float32)],
        axis=0)                                              # (tok_pad, IN_DIM)

    out = pl.pallas_call(
        input_embedding_kernel,
        out_shape=jax.ShapeDtypeStruct((tok_pad, LATENT), jnp.float32),
        in_specs=[pl.BlockSpec(memory_space=pltpu.MemorySpace.VMEM)] * 5,
        out_specs=pl.BlockSpec(memory_space=pltpu.MemorySpace.VMEM),
    )(x, params["w_t"], params["b"], params["cls"], params["pos"])

    return out[:n_tok]                                       # (n + 1, LATENT)


# --------------------------- params & reference --------------------------------
def init_params(key):
    k_w, k_b, k_cls, k_pos = jax.random.split(key, 4)
    bound = 1.0 / math.sqrt(IN_DIM)                          # nn.Linear default bound
    w = jax.random.uniform(k_w, (LATENT, IN_DIM), jnp.float32, -bound, bound)
    b = jax.random.uniform(k_b, (1, LATENT), jnp.float32, -bound, bound)
    cls = jax.random.normal(k_cls, (1, LATENT), dtype=jnp.float32)   # class_token
    pos = jax.random.normal(k_pos, (1, LATENT), dtype=jnp.float32)   # pos_embedding (1,1,L) squeezed
    # w_t pre-transposed ONCE (host side) so the kernel matmul is an MXU-direct
    # ((1,),(0,)) contraction -- no in-kernel transpose.
    return {"w": w, "w_t": jnp.asarray(w.T), "b": b, "cls": cls, "pos": pos}


def reference_forward(params, input_data):
    """Pure-JAX reference matching the PyTorch module (numerics check)."""
    img = input_data[0].astype(jnp.float32)
    c, h, w = img.shape
    pad_h = (PATCH - h % PATCH) % PATCH
    pad_w = (PATCH - w % PATCH) % PATCH
    if pad_h or pad_w:
        img = jnp.pad(img, ((0, 0), (0, pad_h), (0, pad_w)))
    patches = _patchify(img)
    proj = patches @ params["w"].T + params["b"]
    tok = jnp.concatenate([params["cls"], proj], axis=0)
    return tok + params["pos"]


# ----------------------------------- main ---------------------------------------
if __name__ == "__main__":
    key = jax.random.PRNGKey(0)
    k_param, k_input = jax.random.split(key)
    params = init_params(k_param)
    x = jax.random.normal(k_input, (1, CHANNELS, IMG_H, IMG_W), dtype=jnp.float32)

    out = input_embedding_forward(params, x)
    out = jax.block_until_ready(out)

    n_tok = (-(-IMG_H // PATCH)) * (-(-IMG_W // PATCH)) + 1          # 4 patches + cls
    assert out.shape == (n_tok, LATENT), out.shape

    ref = jax.block_until_ready(reference_forward(params, x))
    assert jnp.allclose(out, ref, rtol=5e-2, atol=5e-2), \
        float(jnp.max(jnp.abs(out - ref)))

    print("KERNEL_OK")
</pallas_src>

<mosaic_0001>
module attributes {stable_mosaic.version = 11 : i64} {
  func.func @input_embedding_kernel(%arg0: memref<8x768xf32, #tpu.memory_space<vmem>>, %arg1: memref<768x768xf32, #tpu.memory_space<vmem>>, %arg2: memref<1x768xf32, #tpu.memory_space<vmem>>, %arg3: memref<1x768xf32, #tpu.memory_space<vmem>>, %arg4: memref<1x768xf32, #tpu.memory_space<vmem>>, %arg5: memref<8x768xf32, #tpu.memory_space<vmem>>) attributes {dimension_semantics = [], scalar_prefetch = 0 : i64, scratch_operands = 0 : i64, tpu.core_type = #tpu.core_type<tc>} {
    %c0 = arith.constant 0 : index
    %c0_0 = arith.constant 0 : index
    %0 = vector.load %arg4[%c0, %c0_0] : memref<1x768xf32, #tpu.memory_space<vmem>>, vector<1x768xf32>
    %c0_1 = arith.constant 0 : index
    %c0_2 = arith.constant 0 : index
    %1 = vector.load %arg0[%c0_1, %c0_2] : memref<8x768xf32, #tpu.memory_space<vmem>>, vector<8x768xf32>
    %c0_3 = arith.constant 0 : index
    %c0_4 = arith.constant 0 : index
    %2 = vector.load %arg1[%c0_3, %c0_4] : memref<768x768xf32, #tpu.memory_space<vmem>>, vector<768x768xf32>
    %cst = arith.constant dense<0.000000e+00> : vector<8x768xf32>
    %3 = tpu.matmul %1, %2, %cst {dimension_numbers = #tpu.dot_dimension_numbers<[1], [0], [0], [1], [0, 0, 1, 1], [], []>} : vector<8x768xf32>, vector<768x768xf32>, vector<8x768xf32> -> vector<8x768xf32>
    %c0_5 = arith.constant 0 : index
    %c0_6 = arith.constant 0 : index
    %4 = vector.load %arg2[%c0_5, %c0_6] : memref<1x768xf32, #tpu.memory_space<vmem>>, vector<1x768xf32>
    %5 = arith.addf %4, %0 : vector<1x768xf32>
    %6 = vector.broadcast %5 : vector<1x768xf32> to vector<8x768xf32>
    %7 = arith.addf %3, %6 : vector<8x768xf32>
    %8 = tpu.iota {dimensions = array<i32: 0>} : vector<8x768xi32>
    %c0_i32 = arith.constant 0 : i32
    %9 = vector.broadcast %c0_i32 : i32 to vector<8x768xi32>
    %10 = arith.cmpi eq, %8, %9 : vector<8x768xi32>
    %c0_7 = arith.constant 0 : index
    %c0_8 = arith.constant 0 : index
    %11 = vector.load %arg3[%c0_7, %c0_8] : memref<1x768xf32, #tpu.memory_space<vmem>>, vector<1x768xf32>
    %12 = arith.addf %11, %0 : vector<1x768xf32>
    %13 = vector.shape_cast %12 : vector<1x768xf32> to vector<1x768xf32>
    %14 = vector.broadcast %13 : vector<1x768xf32> to vector<8x768xf32>
    %15 = arith.select %10, %14, %7 : vector<8x768xi1>, vector<8x768xf32>
    %c0_9 = arith.constant 0 : index
    %c0_10 = arith.constant 0 : index
    %16 = vector.load %arg5[%c0_9, %c0_10] : memref<8x768xf32, #tpu.memory_space<vmem>>, vector<8x768xf32>
    tpu.vector_store %arg5[%c0_9, %c0_10], %15 {strides = array<i32>} : memref<8x768xf32, #tpu.memory_space<vmem>>, vector<8x768xf32>,
    return
  }
}

</mosaic_0001>

<bundles_post_ra>
// kernel: input_embedding_forward.1
= control target key start
LH: loop header
LB: loop body
LE: loop exit
PB: predicated region body
PF: predicated region fallthrough
CT: control target
= control target key end

     0   :  { %10 = vsyncpa [#allocation3], 0  ;;  %s2288_s0 = inlined_call_operand.vmem [shape: f32[8,768], index: 0, kind: input, shape index: {}]   ;;  %s2289_s1 = inlined_call_operand.hbm [shape: f32[768,768], index: 1, kind: input, shape index: {}]   ;;  %s2290_s2 = inlined_call_operand.hbm [shape: f32[1,768], index: 2, kind: input, shape index: {}]   ;;  %s2291_s3 = inlined_call_operand.hbm [shape: f32[1,768], index: 3, kind: input, shape index: {}]   ;;  %s2292_s4 = inlined_call_operand.hbm [shape: f32[1,768], index: 4, kind: input, shape index: {}]   ;;  %s2293_s5 = inlined_call_operand.hbm [shape: f32[8,768], index: 5, kind: output, shape index: {}]  }
   0x1   :  { %11 = vsyncpa [#allocation6], 0 }
   0x2   :  { %12 = vsyncpa [#allocation9], 0 }
   0x3   :  { %13 = vsyncpa [#allocation4], 0  ;;  %s2114_s18 = smov [#allocation5]   ;;  %s2115_s20 = smov [#allocation2]  }
   0x4   :  { %s34_s19 = sshll.u32 %s2114_s18, 4  ;;  %s21_s21 = sshll.u32 %s2115_s20, 4  ;;  %s35_s19 = int_to_ptr.vmem [resolvable:$true] %s34_s19  ;;  %s2151_s21 = int_to_ptr.vmem [resolvable:$true] %s21_s21 }
   0x5   :  { %s1996_s24 = scalar_lea.hbm %s2290_s2, 96 }
   0x6   :  { %p1997_p0 = scmp.ne.s32.totalorder %s2290_s2, %s1996_s24  ;;  %p2000_p1 = scmp.lt.u32.totalorder %s1996_s24, %s2290_s2 }
   0x8   :  { %p2002_p2 = pnand %p2000_p1, %p1997_p0 }
   0xa   :  { %2005 = shalt.err (!%p2002_p2)
}
   0xb   :  { %s2006_s29 = scalar_lea.vmem %s35_s19, 96  ;;  %p2011_p4 = scmp.lt.s32.totalorder %s35_s19, %s35_s19 }
   0xc   :  { %p2007_p3 = scmp.ne.s32.totalorder %s35_s19, %s2006_s29  ;;  %p2012_p5 = scmp.lt.s32.totalorder %s2006_s29, %s2006_s29 }
   0xe   :  { %p2013_p6 = por %p2012_p5, %p2011_p4 }
  0x10   :  { %p2014_p7 = pnand %p2013_p6, %p2007_p3 }
  0x12   :  { %2017 = shalt.err (!%p2014_p7)
}
  0x13   :  { %37 = dma.hbm_to_vmem [thread:$0]  %s2290_s2, 96, %s35_s19, [#allocation6]  }
  0x14   :  { %s2018_s9 = scalar_lea.hbm %s2289_s1, 73728 }
  0x15   :  { %p2019_p8 = scmp.ne.s32.totalorder %s2289_s1, %s2018_s9  ;;  %p2022_p9 = scmp.lt.u32.totalorder %s2018_s9, %s2289_s1 }
  0x17   :  { %p2024_p10 = pnand %p2022_p9, %p2019_p8 }
  0x19   :  { %2027 = shalt.err (!%p2024_p10)
}
  0x1a   :  { %s2028_s14 = scalar_lea.vmem %s2151_s21, 73728  ;;  %p2033_p12 = scmp.lt.s32.totalorder %s2151_s21, %s2151_s21 }
  0x1b   :  { %p2029_p11 = scmp.ne.s32.totalorder %s2151_s21, %s2028_s14  ;;  %p2034_p13 = scmp.lt.s32.totalorder %s2028_s14, %s2028_s14 }
  0x1d   :  { %p2035_p0 = por %p2034_p13, %p2033_p12 }
  0x1f   :  { %p2036_p1 = pnand %p2035_p0, %p2029_p11 }
  0x21   :  { %2039 = shalt.err (!%p2036_p1)
}
  0x22   :  { %s2116_s2 = smov 768   ;;  %s2117_s15 = smov 48  }
  0x23   :  { %27 = dma.hbm_to_vmem [thread:$0]  %s2289_s1, 73728, %s2151_s21, [#allocation3], %s2116_s2, %s2116_s2, %s2117_s15  }
  0x24   :  { %s2118_s18 = smov [#allocation7]   ;;  %s2119_s20 = smov [#allocation8]  }
  0x25   :  { %s44_s19 = sshll.u32 %s2118_s18, 4  ;;  %s54_s22 = sshll.u32 %s2119_s20, 4  ;;  %s45_s19 = int_to_ptr.vmem [resolvable:$true] %s44_s19  ;;  %s55_s22 = int_to_ptr.vmem [resolvable:$true] %s54_s22 }
  0x26   :  { %s2040_s25 = scalar_lea.hbm %s2291_s3, 96 }
  0x27   :  { %p2041_p2 = scmp.ne.s32.totalorder %s2291_s3, %s2040_s25  ;;  %p2044_p3 = scmp.lt.u32.totalorder %s2040_s25, %s2291_s3 }
  0x29   :  { %p2046_p4 = pnand %p2044_p3, %p2041_p2 }
  0x2b   :  { %2049 = shalt.err (!%p2046_p4)
}
  0x2c   :  { %s2050_s1 = scalar_lea.vmem %s45_s19, 96  ;;  %p2055_p6 = scmp.lt.s32.totalorder %s45_s19, %s45_s19 }
  0x2d   :  { %p2051_p5 = scmp.ne.s32.totalorder %s45_s19, %s2050_s1  ;;  %p2056_p7 = scmp.lt.s32.totalorder %s2050_s1, %s2050_s1 }
  0x2f   :  { %p2057_p8 = por %p2056_p7, %p2055_p6 }
  0x31   :  { %p2058_p9 = pnand %p2057_p8, %p2051_p5 }
  0x33   :  { %2061 = shalt.err (!%p2058_p9)
}
  0x34   :  { %47 = dma.hbm_to_vmem [thread:$0]  %s2291_s3, 96, %s45_s19, [#allocation6]  }
  0x35   :  { %s2062_s8 = scalar_lea.hbm %s2292_s4, 96 }
  0x36   :  { %p2063_p10 = scmp.ne.s32.totalorder %s2292_s4, %s2062_s8  ;;  %p2066_p11 = scmp.lt.u32.totalorder %s2062_s8, %s2292_s4 }
  0x38   :  { %p2068_p12 = pnand %p2066_p11, %p2063_p10 }
  0x3a   :  { %2071 = shalt.err (!%p2068_p12)
}
  0x3b   :  { %s2072_s13 = scalar_lea.vmem %s55_s22, 96  ;;  %p2077_p0 = scmp.lt.s32.totalorder %s55_s22, %s55_s22 }
  0x3c   :  { %p2073_p13 = scmp.ne.s32.totalorder %s55_s22, %s2072_s13  ;;  %p2078_p1 = scmp.lt.s32.totalorder %s2072_s13, %s2072_s13 }
  0x3e   :  { %p2079_p2 = por %p2078_p1, %p2077_p0 }
  0x40   :  { %p2080_p3 = pnand %p2079_p2, %p2073_p13 }
  0x42   :  { %2083 = shalt.err (!%p2080_p3)
}
  0x43   :  { %57 = dma.hbm_to_vmem [thread:$0]  %s2292_s4, 96, %s55_s22, [#allocation9]  }
  0x44   :  { %2106 = dma.done.wait [#allocation3], 73728  }
  0x45   :  { %2107 = vsyncadd [#allocation3], 4294893568 }
  0x46   :  { %2108 = dma.done.wait [#allocation6], 192  }
  0x47   :  { %2109 = vsyncadd [#allocation6], 4294967104 }
  0x48   :  { %2110 = dma.done.wait [#allocation9], 96  }
  0x49   :  { %2111 = vsyncadd [#allocation9], 4294967200  ;;  %v78_v0 = vld [vmem:[#allocation2 + $0x8] sm:$0xff]  ;;  %v84_v1 = vld [vmem:[#allocation2 + $0x38] sm:$0xff] }
  0x4a   :  { %v270_v2 = vld [vmem:[#allocation2 + $0x608] sm:$0xff]  ;;  %v1390_v3 = vpack.c.bf16 %v84_v1, %v78_v0  ;;  %v276_v4 = vld [vmem:[#allocation2 + $0x638] sm:$0xff]  ;;  %v77_v5 = vld [vmem:[#allocation2] sm:$0xff] }
  0x4b   :  { %v83_v6 = vld [vmem:[#allocation2 + $0x30] sm:$0xff]  ;;  %v1454_v7 = vpack.c.bf16 %v276_v4, %v270_v2  ;;  %v269_v9 = vld [vmem:[#allocation2 + $0x600] sm:$0xff]  ;;  %v90_v11 = vld [vmem:[#allocation2 + $0x68] sm:$0xff] }
  0x4c   :  { %v1392_v8 = vpack.c.bf16 %v83_v6, %v77_v5  ;;  %v275_v10 = vld [vmem:[#allocation2 + $0x630] sm:$0xff]  ;;  %1391 = vmatprep.subr.bf16.mxu1 %v1390_v3  ;;  %v96_v13 = vld [vmem:[#allocation2 + $0x98] sm:$0xff]  ;;  %v282_v14 = vld [vmem:[#allocation2 + $0x668] sm:$0xff] }
  0x4d   :  { %v1456_v12 = vpack.c.bf16 %v275_v10, %v269_v9  ;;  %v288_v15 = vld [vmem:[#allocation2 + $0x698] sm:$0xff]  ;;  %1455 = vmatprep.subr.bf16.mxu0 %v1454_v7  ;;  %v1394_v16 = vpack.c.bf16 %v96_v13, %v90_v11  ;;  %v89_v18 = vld [vmem:[#allocation2 + $0x60] sm:$0xff]  ;;  %v95_v19 = vld [vmem:[#allocation2 + $0x90] sm:$0xff] }
  0x4e   :  { %1393 = vmatpush1.bf16.msra.mxu1 %v1392_v8  ;;  %v1458_v17 = vpack.c.bf16 %v288_v15, %v282_v14  ;;  %v281_v20 = vld [vmem:[#allocation2 + $0x660] sm:$0xff]  ;;  %v1396_v21 = vpack.c.bf16 %v95_v19, %v89_v18  ;;  %v287_v22 = vld [vmem:[#allocation2 + $0x690] sm:$0xff]  ;;  %v102_v23 = vld [vmem:[#allocation2 + $0xc8] sm:$0xff] }
  0x4f   :  { %1457 = vmatpush1.bf16.msra.mxu0 %v1456_v12  ;;  %v108_v24 = vld [vmem:[#allocation2 + $0xf8] sm:$0xff]  ;;  %1395 = vmatprep.subr.bf16.mxu1 %v1394_v16  ;;  %v1460_v25 = vpack.c.bf16 %v287_v22, %v281_v20  ;;  %v294_v27 = vld [vmem:[#allocation2 + $0x6c8] sm:$0xff]  ;;  %v101_v29 = vld [vmem:[#allocation2 + $0xc0] sm:$0xff] }
  0x50   :  { %1459 = vmatprep.subr.bf16.mxu0 %v1458_v17  ;;  %v1398_v26 = vpack.c.bf16 %v108_v24, %v102_v23  ;;  %v300_v28 = vld [vmem:[#allocation2 + $0x6f8] sm:$0xff]  ;;  %v107_v31 = vld [vmem:[#allocation2 + $0xf0] sm:$0xff]  ;;  %v293_v32 = vld [vmem:[#allocation2 + $0x6c0] sm:$0xff] }
  0x51   :  { %v1462_v30 = vpack.c.bf16 %v300_v28, %v294_v27  ;;  %v299_v33 = vld [vmem:[#allocation2 + $0x6f0] sm:$0xff]  ;;  %v1400_v34 = vpack.c.bf16 %v107_v31, %v101_v29  ;;  %v114_v35 = vld [vmem:[#allocation2 + $0x128] sm:$0xff]  ;;  %v120_v36 = vld [vmem:[#allocation2 + $0x158] sm:$0xff] }
  0x52   :  { %1397 = vmatpush1.bf16.msra.mxu1 %v1396_v21  ;;  %v306_v37 = vld [vmem:[#allocation2 + $0x728] sm:$0xff]  ;;  %v1464_v38 = vpack.c.bf16 %v299_v33, %v293_v32  ;;  %v1402_v39 = vpack.c.bf16 %v120_v36, %v114_v35  ;;  %v312_v40 = vld [vmem:[#allocation2 + $0x758] sm:$0xff]  ;;  %v113_v41 = vld [vmem:[#allocation2 + $0x120] sm:$0xff] }
  0x53   :  { %1461 = vmatpush1.bf16.msra.mxu0 %v1460_v25  ;;  %1399 = vmatprep.subr.bf16.mxu1 %v1398_v26  ;;  %v119_v42 = vld [vmem:[#allocation2 + $0x150] sm:$0xff]  ;;  %v1466_v43 = vpack.c.bf16 %v312_v40, %v306_v37  ;;  %v305_v44 = vld [vmem:[#allocation2 + $0x720] sm:$0xff]  ;;  %v126_v46 = vld [vmem:[#allocation2 + $0x188] sm:$0xff] }
  0x54   :  { %1463 = vmatprep.subr.bf16.mxu0 %v1462_v30  ;;  %v311_v45 = vld [vmem:[#allocation2 + $0x750] sm:$0xff]  ;;  %v132_v47 = vld [vmem:[#allocation2 + $0x1b8] sm:$0xff]  ;;  %v318_v48 = vld [vmem:[#allocation2 + $0x788] sm:$0xff]  ;;  %v1404_v50 = vpack.c.bf16 %v119_v42, %v113_v41 }
  0x55   :  { %v324_v49 = vld [vmem:[#allocation2 + $0x7b8] sm:$0xff]  ;;  %v1468_v51 = vpack.c.bf16 %v311_v45, %v305_v44  ;;  %v1406_v52 = vpack.c.bf16 %v132_v47, %v126_v46  ;;  %v125_v53 = vld [vmem:[#allocation2 + $0x180] sm:$0xff]  ;;  %v131_v54 = vld [vmem:[#allocation2 + $0x1b0] sm:$0xff] }
  0x56   :  { %1401 = vmatpush1.bf16.msra.mxu1 %v1400_v34  ;;  %v317_v55 = vld [vmem:[#allocation2 + $0x780] sm:$0xff]  ;;  %v1470_v56 = vpack.c.bf16 %v324_v49, %v318_v48  ;;  %v323_v57 = vld [vmem:[#allocation2 + $0x7b0] sm:$0xff]  ;;  %v138_v58 = vld [vmem:[#allocation2 + $0x1e8] sm:$0xff]  ;;  %v1408_v62 = vpack.c.bf16 %v131_v54, %v125_v53 }
  0x57   :  { %1465 = vmatpush1.bf16.msra.mxu0 %v1464_v38  ;;  %1403 = vmatprep.subr.bf16.mxu1 %v1402_v39  ;;  %v144_v59 = vld [vmem:[#allocation2 + $0x218] sm:$0xff]  ;;  %v330_v60 = vld [vmem:[#allocation2 + $0x7e8] sm:$0xff]  ;;  %v1472_v63 = vpack.c.bf16 %v323_v57, %v317_v55  ;;  %v137_v1 = vld [vmem:[#allocation2 + $0x1e0] sm:$0xff] }
  0x58   :  { %1467 = vmatprep.subr.bf16.mxu0 %v1466_v43  ;;  %v336_v61 = vld [vmem:[#allocation2 + $0x818] sm:$0xff]  ;;  %v1410_v0 = vpack.c.bf16 %v144_v59, %v138_v58  ;;  %v143_v2 = vld [vmem:[#allocation2 + $0x210] sm:$0xff]  ;;  %v329_v3 = vld [vmem:[#allocation2 + $0x7e0] sm:$0xff] }
  0x59   :  { %v1474_v4 = vpack.c.bf16 %v336_v61, %v330_v60  ;;  %v335_v5 = vld [vmem:[#allocation2 + $0x810] sm:$0xff]  ;;  %v150_v6 = vld [vmem:[#allocation2 + $0x248] sm:$0xff]  ;;  %v156_v7 = vld [vmem:[#allocation2 + $0x278] sm:$0xff]  ;;  %v1412_v10 = vpack.c.bf16 %v143_v2, %v137_v1 }
  0x5a   :  { %1405 = vmatpush1.bf16.msra.mxu1 %v1404_v50  ;;  %v342_v8 = vld [vmem:[#allocation2 + $0x848] sm:$0xff]  ;;  %v348_v9 = vld [vmem:[#allocation2 + $0x878] sm:$0xff]  ;;  %v1476_v11 = vpack.c.bf16 %v335_v5, %v329_v3  ;;  %v1414_v12 = vpack.c.bf16 %v156_v7, %v150_v6  ;;  %v149_v13 = vld [vmem:[#allocation2 + $0x240] sm:$0xff] }
  0x5b   :  { %1469 = vmatpush1.bf16.msra.mxu0 %v1468_v51  ;;  %1407 = vmatprep.subr.bf16.mxu1 %v1406_v52  ;;  %v155_v14 = vld [vmem:[#allocation2 + $0x270] sm:$0xff]  ;;  %v341_v15 = vld [vmem:[#allocation2 + $0x840] sm:$0xff]  ;;  %v1478_v16 = vpack.c.bf16 %v348_v9, %v342_v8  ;;  %v162_v18 = vld [vmem:[#allocation2 + $0x2a8] sm:$0xff] }
  0x5c   :  { %1471 = vmatprep.subr.bf16.mxu0 %v1470_v56  ;;  %v347_v17 = vld [vmem:[#allocation2 + $0x870] sm:$0xff]  ;;  %v168_v19 = vld [vmem:[#allocation2 + $0x2d8] sm:$0xff]  ;;  %v354_v20 = vld [vmem:[#allocation2 + $0x8a8] sm:$0xff]  ;;  %v1416_v22 = vpack.c.bf16 %v155_v14, %v149_v13 }
  0x5d   :  { %v360_v21 = vld [vmem:[#allocation2 + $0x8d8] sm:$0xff]  ;;  %v1480_v23 = vpack.c.bf16 %v347_v17, %v341_v15  ;;  %v1418_v24 = vpack.c.bf16 %v168_v19, %v162_v18  ;;  %v161_v25 = vld [vmem:[#allocation2 + $0x2a0] sm:$0xff]  ;;  %v167_v26 = vld [vmem:[#allocation2 + $0x2d0] sm:$0xff] }
  0x5e   :  { %1409 = vmatpush1.bf16.msra.mxu1 %v1408_v62  ;;  %v353_v27 = vld [vmem:[#allocation2 + $0x8a0] sm:$0xff]  ;;  %v1482_v28 = vpack.c.bf16 %v360_v21, %v354_v20  ;;  %v359_v29 = vld [vmem:[#allocation2 + $0x8d0] sm:$0xff]  ;;  %v174_v30 = vld [vmem:[#allocation2 + $0x308] sm:$0xff]  ;;  %v1420_v34 = vpack.c.bf16 %v167_v26, %v161_v25 }
  0x5f   :  { %1473 = vmatpush1.bf16.msra.mxu0 %v1472_v63  ;;  %1411 = vmatprep.subr.bf16.mxu1 %v1410_v0  ;;  %v180_v31 = vld [vmem:[#allocation2 + $0x338] sm:$0xff]  ;;  %v366_v32 = vld [vmem:[#allocation2 + $0x908] sm:$0xff]  ;;  %v1484_v35 = vpack.c.bf16 %v359_v29, %v353_v27  ;;  %v173_v37 = vld [vmem:[#allocation2 + $0x300] sm:$0xff] }
  0x60   :  { %1475 = vmatprep.subr.bf16.mxu0 %v1474_v4  ;;  %v372_v33 = vld [vmem:[#allocation2 + $0x938] sm:$0xff]  ;;  %v1422_v36 = vpack.c.bf16 %v180_v31, %v174_v30  ;;  %v179_v38 = vld [vmem:[#allocation2 + $0x330] sm:$0xff]  ;;  %v365_v39 = vld [vmem:[#allocation2 + $0x900] sm:$0xff] }
  0x61   :  { %v1486_v40 = vpack.c.bf16 %v372_v33, %v366_v32  ;;  %v371_v41 = vld [vmem:[#allocation2 + $0x930] sm:$0xff]  ;;  %v186_v42 = vld [vmem:[#allocation2 + $0x368] sm:$0xff]  ;;  %v192_v43 = vld [vmem:[#allocation2 + $0x398] sm:$0xff]  ;;  %v1424_v46 = vpack.c.bf16 %v179_v38, %v173_v37 }
  0x62   :  { %1413 = vmatpush1.bf16.msra.mxu1 %v1412_v10  ;;  %v378_v44 = vld [vmem:[#allocation2 + $0x968] sm:$0xff]  ;;  %v384_v45 = vld [vmem:[#allocation2 + $0x998] sm:$0xff]  ;;  %v1488_v47 = vpack.c.bf16 %v371_v41, %v365_v39  ;;  %v1426_v48 = vpack.c.bf16 %v192_v43, %v186_v42  ;;  %v185_v49 = vld [vmem:[#allocation2 + $0x360] sm:$0xff] }
  0x63   :  { %1477 = vmatpush1.bf16.msra.mxu0 %v1476_v11  ;;  %1415 = vmatprep.subr.bf16.mxu1 %v1414_v12  ;;  %v191_v50 = vld [vmem:[#allocation2 + $0x390] sm:$0xff]  ;;  %v377_v51 = vld [vmem:[#allocation2 + $0x960] sm:$0xff]  ;;  %v1490_v52 = vpack.c.bf16 %v384_v45, %v378_v44  ;;  %v198_v54 = vld [vmem:[#allocation2 + $0x3c8] sm:$0xff] }
  0x64   :  { %1479 = vmatprep.subr.bf16.mxu0 %v1478_v16  ;;  %v383_v53 = vld [vmem:[#allocation2 + $0x990] sm:$0xff]  ;;  %v204_v55 = vld [vmem:[#allocation2 + $0x3f8] sm:$0xff]  ;;  %v390_v56 = vld [vmem:[#allocation2 + $0x9c8] sm:$0xff]  ;;  %v1428_v58 = vpack.c.bf16 %v191_v50, %v185_v49 }
  0x65   :  { %v396_v57 = vld [vmem:[#allocation2 + $0x9f8] sm:$0xff]  ;;  %v1492_v59 = vpack.c.bf16 %v383_v53, %v377_v51  ;;  %v1430_v60 = vpack.c.bf16 %v204_v55, %v198_v54  ;;  %v197_v61 = vld [vmem:[#allocation2 + $0x3c0] sm:$0xff]  ;;  %v203_v62 = vld [vmem:[#allocation2 + $0x3f0] sm:$0xff] }
  0x66   :  { %1417 = vmatpush1.bf16.msra.mxu1 %v1416_v22  ;;  %v389_v63 = vld [vmem:[#allocation2 + $0x9c0] sm:$0xff]  ;;  %v1494_v0 = vpack.c.bf16 %v396_v57, %v390_v56  ;;  %v395_v1 = vld [vmem:[#allocation2 + $0x9f0] sm:$0xff]  ;;  %v210_v2 = vld [vmem:[#allocation2 + $0x428] sm:$0xff]  ;;  %v1432_v6 = vpack.c.bf16 %v203_v62, %v197_v61 }
  0x67   :  { %1481 = vmatpush1.bf16.msra.mxu0 %v1480_v23  ;;  %1419 = vmatprep.subr.bf16.mxu1 %v1418_v24  ;;  %v216_v3 = vld [vmem:[#allocation2 + $0x458] sm:$0xff]  ;;  %v402_v4 = vld [vmem:[#allocation2 + $0xa28] sm:$0xff]  ;;  %v209_v7 = vld [vmem:[#allocation2 + $0x420] sm:$0xff]  ;;  %v1496_v8 = vpack.c.bf16 %v395_v1, %v389_v63 }
  0x68   :  { %1483 = vmatprep.subr.bf16.mxu0 %v1482_v28  ;;  %v408_v5 = vld [vmem:[#allocation2 + $0xa58] sm:$0xff]  ;;  %v1434_v9 = vpack.c.bf16 %v216_v3, %v210_v2  ;;  %v215_v10 = vld [vmem:[#allocation2 + $0x450] sm:$0xff]  ;;  %v401_v11 = vld [vmem:[#allocation2 + $0xa20] sm:$0xff] }
  0x69   :  { %v407_v12 = vld [vmem:[#allocation2 + $0xa50] sm:$0xff]  ;;  %v1498_v13 = vpack.c.bf16 %v408_v5, %v402_v4  ;;  %v222_v14 = vld [vmem:[#allocation2 + $0x488] sm:$0xff]  ;;  %v228_v15 = vld [vmem:[#allocation2 + $0x4b8] sm:$0xff]  ;;  %v1436_v20 = vpack.c.bf16 %v215_v10, %v209_v7 }
  0x6a   :  { %1421 = vmatpush1.bf16.msra.mxu1 %v1420_v34  ;;  %v2209_v16 = vld [vmem:[%s2288_s0 + $0x8] sm:$0xff]  ;;  %v420_v18 = vld [vmem:[#allocation2 + $0xab8] sm:$0xff]  ;;  %v1500_v21 = vpack.c.bf16 %v407_v12, %v401_v11  ;;  %v1438_v22 = vpack.c.bf16 %v228_v15, %v222_v14  ;;  %v221_v23 = vld [vmem:[#allocation2 + $0x480] sm:$0xff] }
  0x6b   :  { %1485 = vmatpush1.bf16.msra.mxu0 %v1484_v35  ;;  %1423 = vmatprep.subr.bf16.mxu1 %v1422_v36  ;;  %v414_v17 = vld [vmem:[#allocation2 + $0xa88] sm:$0xff]  ;;  %v2215_v19 = vld [vmem:[%s2288_s0 + $0x18] sm:$0xff]  ;;  %v227_v24 = vld [vmem:[#allocation2 + $0x4b0] sm:$0xff] }
  0x6c   :  { %1487 = vmatprep.subr.bf16.mxu0 %v1486_v40  ;;  %750 = vmatprep.mubr.f32.mxu1 %v2209_v16  ;;  %v413_v25 = vld [vmem:[#allocation2 + $0xa80] sm:$0xff]  ;;  %v1502_v26 = vpack.c.bf16 %v420_v18, %v414_v17  ;;  %v419_v27 = vld [vmem:[#allocation2 + $0xab0] sm:$0xff]  ;;  %v234_v28 = vld [vmem:[#allocation2 + $0x4e8] sm:$0xff]  ;;  %v1440_v32 = vpack.c.bf16 %v227_v24, %v221_v23 }
  0x6d   :  { %821 = vmatprep.mubr.f32.mxu0 %v2215_v19  ;;  %v240_v29 = vld [vmem:[#allocation2 + $0x518] sm:$0xff]  ;;  %v426_v30 = vld [vmem:[#allocation2 + $0xae8] sm:$0xff]  ;;  %v1504_v33 = vpack.c.bf16 %v419_v27, %v413_v25  ;;  %v233_v35 = vld [vmem:[#allocation2 + $0x4e0] sm:$0xff] }
  0x6e   :  { %1425 = vmatpush1.bf16.msra.mxu1 %v1424_v46  ;;  %v432_v31 = vld [vmem:[#allocation2 + $0xb18] sm:$0xff]  ;;  %v1442_v34 = vpack.c.bf16 %v240_v29, %v234_v28  ;;  %v239_v36 = vld [vmem:[#allocation2 + $0x510] sm:$0xff]  ;;  %v425_v37 = vld [vmem:[#allocation2 + $0xae0] sm:$0xff] }
  0x6f   :  { %1489 = vmatpush1.bf16.msra.mxu0 %v1488_v47  ;;  %1427 = vmatprep.subr.bf16.mxu1 %v1426_v48  ;;  %v1506_v38 = vpack.c.bf16 %v432_v31, %v426_v30  ;;  %v431_v39 = vld [vmem:[#allocation2 + $0xb10] sm:$0xff]  ;;  %v246_v40 = vld [vmem:[#allocation2 + $0x548] sm:$0xff]  ;;  %v252_v41 = vld [vmem:[#allocation2 + $0x578] sm:$0xff]  ;;  %v1444_v44 = vpack.c.bf16 %v239_v36, %v233_v35 }
  0x70   :  { %1491 = vmatprep.subr.bf16.mxu0 %v1490_v52  ;;  %v438_v42 = vld [vmem:[#allocation2 + $0xb48] sm:$0xff]  ;;  %v444_v43 = vld [vmem:[#allocation2 + $0xb78] sm:$0xff]  ;;  %v1508_v45 = vpack.c.bf16 %v431_v39, %v425_v37  ;;  %v1446_v46 = vpack.c.bf16 %v252_v41, %v246_v40  ;;  %v245_v47 = vld [vmem:[#allocation2 + $0x540] sm:$0xff] }
  0x71   :  { %v251_v48 = vld [vmem:[#allocation2 + $0x570] sm:$0xff]  ;;  %v437_v49 = vld [vmem:[#allocation2 + $0xb40] sm:$0xff]  ;;  %v1510_v50 = vpack.c.bf16 %v444_v43, %v438_v42  ;;  %v258_v52 = vld [vmem:[#allocation2 + $0x5a8] sm:$0xff] }
  0x72   :  { %1429 = vmatpush1.bf16.msra.mxu1 %v1428_v58  ;;  %v443_v51 = vld [vmem:[#allocation2 + $0xb70] sm:$0xff]  ;;  %v264_v53 = vld [vmem:[#allocation2 + $0x5d8] sm:$0xff]  ;;  %v450_v54 = vld [vmem:[#allocation2 + $0xba8] sm:$0xff]  ;;  %v1448_v56 = vpack.c.bf16 %v251_v48, %v245_v47 }
  0x73   :  { %1493 = vmatpush1.bf16.msra.mxu0 %v1492_v59  ;;  %1431 = vmatprep.subr.bf16.mxu1 %v1430_v60  ;;  %v456_v55 = vld [vmem:[#allocation2 + $0xbd8] sm:$0xff]  ;;  %v1512_v57 = vpack.c.bf16 %v443_v51, %v437_v49  ;;  %v1450_v58 = vpack.c.bf16 %v264_v53, %v258_v52  ;;  %v257_v59 = vld [vmem:[#allocation2 + $0x5a0] sm:$0xff]  ;;  %v263_v60 = vld [vmem:[#allocation2 + $0x5d0] sm:$0xff] }
  0x74   :  { %1495 = vmatprep.subr.bf16.mxu0 %v1494_v0  ;;  %v449_v61 = vld [vmem:[#allocation2 + $0xba0] sm:$0xff]  ;;  %v1514_v62 = vpack.c.bf16 %v456_v55, %v450_v54  ;;  %v455_v63 = vld [vmem:[#allocation2 + $0xbd0] sm:$0xff]  ;;  %v80_v0 = vld [vmem:[#allocation2 + $0x18] sm:$0xff]  ;;  %v1452_v4 = vpack.c.bf16 %v263_v60, %v257_v59 }
  0x75   :  { %v86_v1 = vld [vmem:[#allocation2 + $0x48] sm:$0xff]  ;;  %v468_v3 = vld [vmem:[#allocation2 + $0xc38] sm:$0xff]  ;;  %v1516_v5 = vpack.c.bf16 %v455_v63, %v449_v61  ;;  %v461_v7 = vld [vmem:[#allocation2 + $0xc00] sm:$0xff] }
  0x76   :  { %1433 = vmatpush1.bf16.msra.mxu1 %v1432_v6  ;;  %v462_v2 = vld [vmem:[#allocation2 + $0xc08] sm:$0xff]  ;;  %v1582_v6 = vpack.c.bf16 %v86_v1, %v80_v0  ;;  %v467_v11 = vld [vmem:[#allocation2 + $0xc30] sm:$0xff]  ;;  %v92_v12 = vld [vmem:[#allocation2 + $0x78] sm:$0xff] }
  0x77   :  { %1497 = vmatpush1.bf16.msra.mxu0 %v1496_v8  ;;  %1435 = vmatprep.subr.bf16.mxu1 %v1434_v9  ;;  %v79_v8 = vld [vmem:[#allocation2 + $0x10] sm:$0xff]  ;;  %v85_v9 = vld [vmem:[#allocation2 + $0x40] sm:$0xff]  ;;  %v1518_v10 = vpack.c.bf16 %v468_v3, %v462_v2  ;;  %v474_v14 = vld [vmem:[#allocation2 + $0xc68] sm:$0xff] }
  0x78   :  { %1499 = vmatprep.subr.bf16.mxu0 %v1498_v13  ;;  %v98_v13 = vld [vmem:[#allocation2 + $0xa8] sm:$0xff]  ;;  %v480_v15 = vld [vmem:[#allocation2 + $0xc98] sm:$0xff]  ;;  %v2221_v17 = vld [vmem:[%s2288_s0] sm:$0xff] }
  0x79   :  { %v73_v18 = vld [vmem:[%s2288_s0 + $0x10] sm:$0xff]  ;;  %v473_v23 = vld [vmem:[#allocation2 + $0xc60] sm:$0xff]  ;;  %v104_v28 = vld [vmem:[#allocation2 + $0xd8] sm:$0xff] }
  0x7a   :  { %1437 = vmatpush1.bf16.msra.mxu1 %v1436_v20  ;;  %v1584_v20 = vpack.c.bf16 %v85_v9, %v79_v8  ;;  %v91_v24 = vld [vmem:[#allocation2 + $0x70] sm:$0xff]  ;;  %v97_v25 = vld [vmem:[#allocation2 + $0xa0] sm:$0xff]  ;;  %v110_v29 = vld [vmem:[#allocation2 + $0x108] sm:$0xff] }
  0x7b   :  { %1501 = vmatpush1.bf16.msra.mxu0 %v1500_v21  ;;  %1439 = vmatprep.subr.bf16.mxu1 %v1438_v22  ;;  %v1520_v21 = vpack.c.bf16 %v467_v11, %v461_v7  ;;  %v1586_v22 = vpack.c.bf16 %v98_v13, %v92_v12  ;;  %v479_v27 = vld [vmem:[#allocation2 + $0xc90] sm:$0xff]  ;;  %v486_v30 = vld [vmem:[#allocation2 + $0xcc8] sm:$0xff]  ;;  %v492_v31 = vld [vmem:[#allocation2 + $0xcf8] sm:$0xff] }
  0x7c   :  { %1503 = vmatprep.subr.bf16.mxu0 %v1502_v26  ;;  %v1522_v26 = vpack.c.bf16 %v480_v15, %v474_v14  ;;  %v485_v35 = vld [vmem:[#allocation2 + $0xcc0] sm:$0xff]  ;;  %v103_v36 = vld [vmem:[#allocation2 + $0xd0] sm:$0xff]  ;;  %v116_v40 = vld [vmem:[#allocation2 + $0x138] sm:$0xff] }
  0x7d   :  { %v109_v37 = vld [vmem:[#allocation2 + $0x100] sm:$0xff]  ;;  %v491_v39 = vld [vmem:[#allocation2 + $0xcf0] sm:$0xff]  ;;  %v122_v41 = vld [vmem:[#allocation2 + $0x168] sm:$0xff] }
  0x7e   :  { %1441 = vmatpush1.bf16.msra.mxu1 %v1440_v32  ;;  %v1588_v32 = vpack.c.bf16 %v97_v25, %v91_v24  ;;  %v498_v42 = vld [vmem:[#allocation2 + $0xd28] sm:$0xff]  ;;  %v504_v43 = vld [vmem:[#allocation2 + $0xd58] sm:$0xff]  ;;  %v497_v47 = vld [vmem:[#allocation2 + $0xd20] sm:$0xff] }
  0x7f   :  { %1505 = vmatpush1.bf16.msra.mxu0 %v1504_v33  ;;  %1443 = vmatprep.subr.bf16.mxu1 %v1442_v34  ;;  %v1524_v33 = vpack.c.bf16 %v479_v27, %v473_v23  ;;  %v1590_v34 = vpack.c.bf16 %v110_v29, %v104_v28  ;;  %v115_v48 = vld [vmem:[#allocation2 + $0x130] sm:$0xff]  ;;  %v121_v49 = vld [vmem:[#allocation2 + $0x160] sm:$0xff]  ;;  %v128_v52 = vld [vmem:[#allocation2 + $0x198] sm:$0xff] }
  0x80   :  { %1507 = vmatprep.subr.bf16.mxu0 %v1506_v38  ;;  %v1526_v38 = vpack.c.bf16 %v492_v31, %v486_v30  ;;  %v503_v51 = vld [vmem:[#allocation2 + $0xd50] sm:$0xff]  ;;  %v134_v53 = vld [vmem:[#allocation2 + $0x1c8] sm:$0xff]  ;;  %v516_v55 = vld [vmem:[#allocation2 + $0xdb8] sm:$0xff] }
  0x81   :  { %v510_v54 = vld [vmem:[#allocation2 + $0xd88] sm:$0xff]  ;;  %v509_v59 = vld [vmem:[#allocation2 + $0xd80] sm:$0xff]  ;;  %v127_v60 = vld [vmem:[#allocation2 + $0x190] sm:$0xff] }
  0x82   :  { %1445 = vmatpush1.bf16.msra.mxu1 %v1444_v44  ;;  %v1592_v44 = vpack.c.bf16 %v109_v37, %v103_v36  ;;  %v133_v61 = vld [vmem:[#allocation2 + $0x1c0] sm:$0xff]  ;;  %v515_v63 = vld [vmem:[#allocation2 + $0xdb0] sm:$0xff]  ;;  %v140_v0 = vld [vmem:[#allocation2 + $0x1f8] sm:$0xff] }
  0x83   :  { %1509 = vmatpush1.bf16.msra.mxu0 %v1508_v45  ;;  %1447 = vmatprep.subr.bf16.mxu1 %v1446_v46  ;;  %v1528_v45 = vpack.c.bf16 %v491_v39, %v485_v35  ;;  %v1594_v46 = vpack.c.bf16 %v122_v41, %v116_v40  ;;  %v146_v1 = vld [vmem:[#allocation2 + $0x228] sm:$0xff]  ;;  %v528_v3 = vld [vmem:[#allocation2 + $0xe18] sm:$0xff]  ;;  %v521_v7 = vld [vmem:[#allocation2 + $0xde0] sm:$0xff] }
  0x84   :  { %1511 = vmatprep.subr.bf16.mxu0 %v1510_v50  ;;  %v1530_v50 = vpack.c.bf16 %v504_v43, %v498_v42  ;;  %v522_v2 = vld [vmem:[#allocation2 + $0xde8] sm:$0xff]  ;;  %v139_v8 = vld [vmem:[#allocation2 + $0x1f0] sm:$0xff]  ;;  %v145_v9 = vld [vmem:[#allocation2 + $0x220] sm:$0xff] }
  0x85   :  { %v527_v11 = vld [vmem:[#allocation2 + $0xe10] sm:$0xff]  ;;  %v152_v12 = vld [vmem:[#allocation2 + $0x258] sm:$0xff]  ;;  %v158_v13 = vld [vmem:[#allocation2 + $0x288] sm:$0xff] }
  0x86   :  { %1449 = vmatpush1.bf16.msra.mxu1 %v1448_v56  ;;  %v1596_v56 = vpack.c.bf16 %v121_v49, %v115_v48  ;;  %v534_v14 = vld [vmem:[#allocation2 + $0xe48] sm:$0xff]  ;;  %v540_v15 = vld [vmem:[#allocation2 + $0xe78] sm:$0xff]  ;;  %v539_v23 = vld [vmem:[#allocation2 + $0xe70] sm:$0xff] }
  0x87   :  { %1513 = vmatpush1.bf16.msra.mxu0 %v1512_v57  ;;  %1451 = vmatprep.subr.bf16.mxu1 %v1450_v58  ;;  %v1532_v57 = vpack.c.bf16 %v503_v51, %v497_v47  ;;  %v1598_v58 = vpack.c.bf16 %v134_v53, %v128_v52  ;;  %v151_v24 = vld [vmem:[#allocation2 + $0x250] sm:$0xff]  ;;  %v157_v25 = vld [vmem:[#allocation2 + $0x280] sm:$0xff]  ;;  %v164_v27 = vld [vmem:[#allocation2 + $0x2b8] sm:$0xff] }
  0x88   :  { %1515 = vmatprep.subr.bf16.mxu0 %v1514_v62  ;;  %v1534_v62 = vpack.c.bf16 %v516_v55, %v510_v54  ;;  %v170_v28 = vld [vmem:[#allocation2 + $0x2e8] sm:$0xff]  ;;  %v552_v31 = vld [vmem:[#allocation2 + $0xed8] sm:$0xff]  ;;  %v545_v35 = vld [vmem:[#allocation2 + $0xea0] sm:$0xff] }
  0x89   :  { %v2231_v29 = vld [vmem:[%s2288_s0 + $0x28] sm:$0xff]  ;;  %v163_v36 = vld [vmem:[#allocation2 + $0x2b0] sm:$0xff]  ;;  %v169_v37 = vld [vmem:[#allocation2 + $0x2e0] sm:$0xff] }
  0x8a   :  { %1453 = vmatpush1.bf16.msra.mxu1 %v1452_v4  ;;  %v1600_v4 = vpack.c.bf16 %v133_v61, %v127_v60  ;;  %v546_v30 = vld [vmem:[#allocation2 + $0xea8] sm:$0xff]  ;;  %v551_v39 = vld [vmem:[#allocation2 + $0xed0] sm:$0xff]  ;;  %v176_v40 = vld [vmem:[#allocation2 + $0x318] sm:$0xff] }
  0x8b   :  { %1517 = vmatpush1.bf16.msra.mxu0 %v1516_v5  ;;  %1583 = vmatprep.subr.bf16.mxu1 %v1582_v6  ;;  %v1536_v5 = vpack.c.bf16 %v515_v63, %v509_v59  ;;  %v1602_v6 = vpack.c.bf16 %v146_v1, %v140_v0  ;;  %v182_v41 = vld [vmem:[#allocation2 + $0x348] sm:$0xff]  ;;  %v564_v43 = vld [vmem:[#allocation2 + $0xf38] sm:$0xff]  ;;  %v557_v47 = vld [vmem:[#allocation2 + $0xf00] sm:$0xff] }
  0x8c   :  { %1519 = vmatprep.subr.bf16.mxu0 %v1518_v10  ;;  %v1538_v10 = vpack.c.bf16 %v528_v3, %v522_v2  ;;  %v558_v42 = vld [vmem:[#allocation2 + $0xf08] sm:$0xff]  ;;  %v175_v48 = vld [vmem:[#allocation2 + $0x310] sm:$0xff]  ;;  %v181_v49 = vld [vmem:[#allocation2 + $0x340] sm:$0xff] }
  0x8d   :  { %751 = vmatmul.mubr.f32.vlgmr.msra.gmra.mrb[0].mxu1 %v2221_v17  ;;  %v563_v51 = vld [vmem:[#allocation2 + $0xf30] sm:$0xff]  ;;  %v188_v52 = vld [vmem:[#allocation2 + $0x378] sm:$0xff]  ;;  %v194_v53 = vld [vmem:[#allocation2 + $0x3a8] sm:$0xff] }
  0x8e   :  { %822 = vmatmul.mubr.f32.vlgmr.msra.gmra.mrb[0].mxu0 %v73_v18  ;;  %1585 = vmatpush1.bf16.msra.mxu1 %v1584_v20  ;;  %v1604_v18 = vpack.c.bf16 %v145_v9, %v139_v8  ;;  %v533_v20 = vld [vmem:[#allocation2 + $0xe40] sm:$0xff]  ;;  %v570_v54 = vld [vmem:[#allocation2 + $0xf68] sm:$0xff]  ;;  %v576_v55 = vld [vmem:[#allocation2 + $0xf98] sm:$0xff] }
  0x8f   :  { %1521 = vmatpush1.bf16.msra.mxu0 %v1520_v21  ;;  %1587 = vmatprep.subr.bf16.mxu1 %v1586_v22  ;;  %v1540_v21 = vpack.c.bf16 %v527_v11, %v521_v7  ;;  %v1606_v22 = vpack.c.bf16 %v158_v13, %v152_v12  ;;  %v569_v59 = vld [vmem:[#allocation2 + $0xf60] sm:$0xff]  ;;  %v187_v60 = vld [vmem:[#allocation2 + $0x370] sm:$0xff]  ;;  %v200_v0 = vld [vmem:[#allocation2 + $0x3d8] sm:$0xff] }
  0x90   :  { %1523 = vmatprep.subr.bf16.mxu0 %v1522_v26  ;;  %963 = vmatprep.mubr.f32.mxu1 %v2209_v16  ;;  %v1542_v26 = vpack.c.bf16 %v540_v15, %v534_v14  ;;  %v193_v61 = vld [vmem:[#allocation2 + $0x3a0] sm:$0xff]  ;;  %v575_v63 = vld [vmem:[#allocation2 + $0xf90] sm:$0xff]  ;;  %v206_v1 = vld [vmem:[#allocation2 + $0x408] sm:$0xff] }
  0x91   :  { %892 = vmatprep.mubr.f32.mxu0 %v2231_v29  ;;  %v582_v2 = vld [vmem:[#allocation2 + $0xfc8] sm:$0xff]  ;;  %v588_v3 = vld [vmem:[#allocation2 + $0xff8] sm:$0xff]  ;;  %v581_v7 = vld [vmem:[#allocation2 + $0xfc0] sm:$0xff] }
  0x92   :  { %1589 = vmatpush1.bf16.msra.mxu1 %v1588_v32  ;;  %v1608_v32 = vpack.c.bf16 %v157_v25, %v151_v24  ;;  %v199_v8 = vld [vmem:[#allocation2 + $0x3d0] sm:$0xff]  ;;  %v205_v9 = vld [vmem:[#allocation2 + $0x400] sm:$0xff]  ;;  %v212_v12 = vld [vmem:[#allocation2 + $0x438] sm:$0xff] }
  0x93   :  { %1525 = vmatpush1.bf16.msra.mxu0 %v1524_v33  ;;  %1591 = vmatprep.subr.bf16.mxu1 %v1590_v34  ;;  %v1544_v33 = vpack.c.bf16 %v539_v23, %v533_v20  ;;  %v1610_v34 = vpack.c.bf16 %v170_v28, %v164_v27  ;;  %v587_v11 = vld [vmem:[#allocation2 + $0xff0] sm:$0xff]  ;;  %v218_v13 = vld [vmem:[#allocation2 + $0x468] sm:$0xff]  ;;  %v600_v15 = vld [vmem:[#allocation2 + $0x1058] sm:$0xff] }
  0x94   :  { %1527 = vmatprep.subr.bf16.mxu0 %v1526_v38  ;;  %v1546_v38 = vpack.c.bf16 %v552_v31, %v546_v30  ;;  %v594_v14 = vld [vmem:[#allocation2 + $0x1028] sm:$0xff]  ;;  %v1560_v20 = vpack.c.bf16 %v587_v11, %v581_v7  ;;  %v211_v23 = vld [vmem:[#allocation2 + $0x430] sm:$0xff]  ;;  %v217_v24 = vld [vmem:[#allocation2 + $0x460] sm:$0xff] }
  0x95   :  { %v1562_v25 = vpack.c.bf16 %v600_v15, %v594_v14  ;;  %v224_v27 = vld [vmem:[#allocation2 + $0x498] sm:$0xff]  ;;  %v230_v28 = vld [vmem:[#allocation2 + $0x4c8] sm:$0xff]  ;;  %v641_v7 = vld [vmem:[#allocation2 + $0x11a0] sm:$0xff] }
  0x96   :  { %1593 = vmatpush1.bf16.msra.mxu1 %v1592_v44  ;;  %v1612_v44 = vpack.c.bf16 %v169_v37, %v163_v36  ;;  %v606_v30 = vld [vmem:[#allocation2 + $0x1088] sm:$0xff]  ;;  %v612_v31 = vld [vmem:[#allocation2 + $0x10b8] sm:$0xff]  ;;  %v223_v36 = vld [vmem:[#allocation2 + $0x490] sm:$0xff] }
  0x97   :  { %1529 = vmatpush1.bf16.msra.mxu0 %v1528_v45  ;;  %1595 = vmatprep.subr.bf16.mxu1 %v1594_v46  ;;  %v1548_v45 = vpack.c.bf16 %v551_v39, %v545_v35  ;;  %v1614_v46 = vpack.c.bf16 %v182_v41, %v176_v40  ;;  %v605_v35 = vld [vmem:[#allocation2 + $0x1080] sm:$0xff]  ;;  %v611_v39 = vld [vmem:[#allocation2 + $0x10b0] sm:$0xff]  ;;  %v236_v40 = vld [vmem:[#allocation2 + $0x4f8] sm:$0xff] }
  0x98   :  { %1531 = vmatprep.subr.bf16.mxu0 %v1530_v50  ;;  %v1550_v50 = vpack.c.bf16 %v564_v43, %v558_v42  ;;  %v229_v37 = vld [vmem:[#allocation2 + $0x4c0] sm:$0xff]  ;;  %v242_v41 = vld [vmem:[#allocation2 + $0x528] sm:$0xff]  ;;  %v624_v43 = vld [vmem:[#allocation2 + $0x1118] sm:$0xff] }
  0x99   :  { %v618_v42 = vld [vmem:[#allocation2 + $0x10e8] sm:$0xff]  ;;  %v647_v11 = vld [vmem:[#allocation2 + $0x11d0] sm:$0xff]  ;;  %v88_v15 = vld [vmem:[#allocation2 + $0x58] sm:$0xff] }
  0x9a   :  { %1597 = vmatpush1.bf16.msra.mxu1 %v1596_v56  ;;  %v1616_v56 = vpack.c.bf16 %v181_v49, %v175_v48  ;;  %v235_v48 = vld [vmem:[#allocation2 + $0x4f0] sm:$0xff]  ;;  %v241_v49 = vld [vmem:[#allocation2 + $0x520] sm:$0xff]  ;;  %v82_v14 = vld [vmem:[#allocation2 + $0x28] sm:$0xff] }
  0x9b   :  { %1533 = vmatpush1.bf16.msra.mxu0 %v1532_v57  ;;  %1599 = vmatprep.subr.bf16.mxu1 %v1598_v58  ;;  %v1552_v57 = vpack.c.bf16 %v563_v51, %v557_v47  ;;  %v1618_v58 = vpack.c.bf16 %v194_v53, %v188_v52  ;;  %v617_v47 = vld [vmem:[#allocation2 + $0x10e0] sm:$0xff]  ;;  %v623_v51 = vld [vmem:[#allocation2 + $0x1110] sm:$0xff]  ;;  %v248_v52 = vld [vmem:[#allocation2 + $0x558] sm:$0xff] }
  0x9c   :  { %1535 = vmatprep.subr.bf16.mxu0 %v1534_v62  ;;  %v1554_v62 = vpack.c.bf16 %v576_v55, %v570_v54  ;;  %v254_v53 = vld [vmem:[#allocation2 + $0x588] sm:$0xff]  ;;  %v636_v55 = vld [vmem:[#allocation2 + $0x1178] sm:$0xff] }
  0x9d   :  { %v630_v54 = vld [vmem:[#allocation2 + $0x1148] sm:$0xff] }
  0x9e   :  { %1601 = vmatpush1.bf16.msra.mxu1 %v1600_v4  ;;  %v1620_v4 = vpack.c.bf16 %v193_v61, %v187_v60  ;;  %v247_v60 = vld [vmem:[#allocation2 + $0x550] sm:$0xff]  ;;  %v253_v61 = vld [vmem:[#allocation2 + $0x580] sm:$0xff] }
  0x9f   :  { %1537 = vmatpush1.bf16.msra.mxu0 %v1536_v5  ;;  %1603 = vmatprep.subr.bf16.mxu1 %v1602_v6  ;;  %v1556_v5 = vpack.c.bf16 %v575_v63, %v569_v59  ;;  %v1622_v6 = vpack.c.bf16 %v206_v1, %v200_v0  ;;  %v629_v59 = vld [vmem:[#allocation2 + $0x1140] sm:$0xff]  ;;  %v635_v63 = vld [vmem:[#allocation2 + $0x1170] sm:$0xff]  ;;  %v260_v0 = vld [vmem:[#allocation2 + $0x5b8] sm:$0xff] }
  0xa0   :  { %1539 = vmatprep.subr.bf16.mxu0 %v1538_v10  ;;  %v1558_v10 = vpack.c.bf16 %v588_v3, %v582_v2  ;;  %v266_v1 = vld [vmem:[#allocation2 + $0x5e8] sm:$0xff]  ;;  %v648_v3 = vld [vmem:[#allocation2 + $0x11d8] sm:$0xff] }
  0xa1   :  { %v642_v2 = vld [vmem:[#allocation2 + $0x11a8] sm:$0xff] }
  0xa2   :  { %1605 = vmatpush1.bf16.msra.mxu1 %v1604_v18  ;;  %v1624_v18 = vpack.c.bf16 %v205_v9, %v199_v8  ;;  %v259_v8 = vld [vmem:[#allocation2 + $0x5b0] sm:$0xff]  ;;  %v265_v9 = vld [vmem:[#allocation2 + $0x5e0] sm:$0xff] }
  0xa3   :  { %1541 = vmatpush1.bf16.msra.mxu0 %v1540_v21  ;;  %1607 = vmatprep.subr.bf16.mxu1 %v1606_v22  ;;  %v1626_v21 = vpack.c.bf16 %v218_v13, %v212_v12  ;;  %v593_v22 = vld [vmem:[#allocation2 + $0x1020] sm:$0xff]  ;;  %v272_v12 = vld [vmem:[#allocation2 + $0x618] sm:$0xff]  ;;  %v278_v13 = vld [vmem:[#allocation2 + $0x648] sm:$0xff] }
  0xa4   :  { %1543 = vmatprep.subr.bf16.mxu0 %v1542_v26  ;;  %v599_v26 = vld [vmem:[#allocation2 + $0x1050] sm:$0xff] }
  0xa6   :  { %1609 = vmatpush1.bf16.msra.mxu1 %v1608_v32  ;;  %v1628_v32 = vpack.c.bf16 %v217_v24, %v211_v23  ;;  %v277_v23 = vld [vmem:[#allocation2 + $0x640] sm:$0xff] }
  0xa7   :  { %1545 = vmatpush1.bf16.msra.mxu0 %v1544_v33  ;;  %1611 = vmatprep.subr.bf16.mxu1 %v1610_v34  ;;  %v1564_v33 = vpack.c.bf16 %v599_v26, %v593_v22  ;;  %v1630_v34 = vpack.c.bf16 %v230_v28, %v224_v27  ;;  %v271_v22 = vld [vmem:[#allocation2 + $0x610] sm:$0xff]  ;;  %v81_v24 = vld [vmem:[#allocation2 + $0x20] sm:$0xff]  ;;  %v284_v27 = vld [vmem:[#allocation2 + $0x678] sm:$0xff] }
  0xa8   :  { %1547 = vmatprep.subr.bf16.mxu0 %v1546_v38  ;;  %v1566_v38 = vpack.c.bf16 %v612_v31, %v606_v30  ;;  %v87_v26 = vld [vmem:[#allocation2 + $0x50] sm:$0xff]  ;;  %v290_v28 = vld [vmem:[#allocation2 + $0x6a8] sm:$0xff]  ;;  %v100_v31 = vld [vmem:[#allocation2 + $0xb8] sm:$0xff] }
  0xa9   :  { %v94_v30 = vld [vmem:[#allocation2 + $0x88] sm:$0xff] }
  0xaa   :  { %1613 = vmatpush1.bf16.msra.mxu1 %v1612_v44  ;;  %v1632_v44 = vpack.c.bf16 %v229_v37, %v223_v36  ;;  %v283_v36 = vld [vmem:[#allocation2 + $0x670] sm:$0xff]  ;;  %v289_v37 = vld [vmem:[#allocation2 + $0x6a0] sm:$0xff] }
  0xab   :  { %1549 = vmatpush1.bf16.msra.mxu0 %v1548_v45  ;;  %1615 = vmatprep.subr.bf16.mxu1 %v1614_v46  ;;  %v1568_v45 = vpack.c.bf16 %v611_v39, %v605_v35  ;;  %v1634_v46 = vpack.c.bf16 %v242_v41, %v236_v40  ;;  %v1650_v35 = vpack.c.bf16 %v290_v28, %v284_v27  ;;  %v99_v40 = vld [vmem:[#allocation2 + $0xb0] sm:$0xff]  ;;  %v296_v41 = vld [vmem:[#allocation2 + $0x6d8] sm:$0xff]  ;;  %v154_v27 = vld [vmem:[#allocation2 + $0x268] sm:$0xff] }
  0xac   :  { %1551 = vmatprep.subr.bf16.mxu0 %v1550_v50  ;;  %v1570_v50 = vpack.c.bf16 %v624_v43, %v618_v42  ;;  %v1778_v39 = vpack.c.bf16 %v100_v31, %v94_v30  ;;  %v302_v42 = vld [vmem:[#allocation2 + $0x708] sm:$0xff]  ;;  %v160_v28 = vld [vmem:[#allocation2 + $0x298] sm:$0xff] }
  0xad   :  { %v106_v43 = vld [vmem:[#allocation2 + $0xe8] sm:$0xff] }
  0xae   :  { %1617 = vmatpush1.bf16.msra.mxu1 %v1616_v56  ;;  %v1636_v56 = vpack.c.bf16 %v241_v49, %v235_v48  ;;  %v295_v48 = vld [vmem:[#allocation2 + $0x6d0] sm:$0xff]  ;;  %v301_v49 = vld [vmem:[#allocation2 + $0x700] sm:$0xff] }
  0xaf   :  { %1553 = vmatpush1.bf16.msra.mxu0 %v1552_v57  ;;  %1619 = vmatprep.subr.bf16.mxu1 %v1618_v58  ;;  %v1572_v57 = vpack.c.bf16 %v623_v51, %v617_v47  ;;  %v1638_v58 = vpack.c.bf16 %v254_v53, %v248_v52  ;;  %v1654_v47 = vpack.c.bf16 %v302_v42, %v296_v41  ;;  %v111_v52 = vld [vmem:[#allocation2 + $0x110] sm:$0xff]  ;;  %v308_v53 = vld [vmem:[#allocation2 + $0x738] sm:$0xff] }
  0xb0   :  { %1555 = vmatprep.subr.bf16.mxu0 %v1554_v62  ;;  %v1574_v62 = vpack.c.bf16 %v636_v55, %v630_v54  ;;  %v314_v54 = vld [vmem:[#allocation2 + $0x768] sm:$0xff]  ;;  %v124_v55 = vld [vmem:[#allocation2 + $0x178] sm:$0xff] }
  0xb1   :  { %v172_v41 = vld [vmem:[#allocation2 + $0x2f8] sm:$0xff] }
  0xb2   :  { %1621 = vmatpush1.bf16.msra.mxu1 %v1620_v4  ;;  %v1640_v4 = vpack.c.bf16 %v253_v61, %v247_v60  ;;  %v313_v60 = vld [vmem:[#allocation2 + $0x760] sm:$0xff] }
  0xb3   :  { %1557 = vmatpush1.bf16.msra.mxu0 %v1556_v5  ;;  %1623 = vmatprep.subr.bf16.mxu1 %v1622_v6  ;;  %v1576_v5 = vpack.c.bf16 %v635_v63, %v629_v59  ;;  %v1642_v6 = vpack.c.bf16 %v266_v1, %v260_v0  ;;  %v307_v59 = vld [vmem:[#allocation2 + $0x730] sm:$0xff]  ;;  %v117_v61 = vld [vmem:[#allocation2 + $0x140] sm:$0xff]  ;;  %v320_v0 = vld [vmem:[#allocation2 + $0x798] sm:$0xff] }
  0xb4   :  { %1559 = vmatprep.subr.bf16.mxu0 %v1558_v10  ;;  %v1578_v10 = vpack.c.bf16 %v648_v3, %v642_v2  ;;  %v123_v63 = vld [vmem:[#allocation2 + $0x170] sm:$0xff]  ;;  %v326_v1 = vld [vmem:[#allocation2 + $0x7c8] sm:$0xff]  ;;  %v1660_v3 = vpack.c.bf16 %v313_v60, %v307_v59 }
  0xb5   :  { %v130_v2 = vld [vmem:[#allocation2 + $0x1a8] sm:$0xff]  ;;  %v183_v60 = vld [vmem:[#allocation2 + $0x350] sm:$0xff] }
  0xb6   :  { %1625 = vmatpush1.bf16.msra.mxu1 %v1624_v18  ;;  %v1644_v18 = vpack.c.bf16 %v265_v9, %v259_v8  ;;  %v135_v9 = vld [vmem:[#allocation2 + $0x1d0] sm:$0xff] }
  0xb7   :  { %1561 = vmatpush1.bf16.msra.mxu0 %v1560_v20  ;;  %1627 = vmatprep.subr.bf16.mxu1 %v1626_v21  ;;  %v1580_v20 = vpack.c.bf16 %v647_v11, %v641_v7  ;;  %v1646_v21 = vpack.c.bf16 %v278_v13, %v272_v12  ;;  %v129_v7 = vld [vmem:[#allocation2 + $0x1a0] sm:$0xff]  ;;  %v338_v11 = vld [vmem:[#allocation2 + $0x828] sm:$0xff]  ;;  %v148_v13 = vld [vmem:[#allocation2 + $0x238] sm:$0xff] }
  0xb8   :  { %1563 = vmatprep.subr.bf16.mxu0 %v1562_v25  ;;  %v1774_v25 = vpack.c.bf16 %v88_v15, %v82_v14  ;;  %v142_v12 = vld [vmem:[#allocation2 + $0x208] sm:$0xff]  ;;  %v1792_v15 = vpack.c.bf16 %v135_v9, %v129_v7  ;;  %v392_v7 = vld [vmem:[#allocation2 + $0x9d8] sm:$0xff] }
  0xb9   :  { %v202_v9 = vld [vmem:[#allocation2 + $0x3e8] sm:$0xff] }
  0xba   :  { %1629 = vmatpush1.bf16.msra.mxu1 %v1628_v32  ;;  %v75_v32 = vld [vmem:[%s2288_s0 + $0x20] sm:$0xff] }
  0xbb   :  { %1565 = vmatpush1.bf16.msra.mxu0 %v1564_v33  ;;  %1631 = vmatprep.subr.bf16.mxu1 %v1630_v34  ;;  %v1648_v33 = vpack.c.bf16 %v277_v23, %v271_v22  ;;  %v1776_v34 = vpack.c.bf16 %v87_v26, %v81_v24  ;;  %v141_v22 = vld [vmem:[#allocation2 + $0x200] sm:$0xff]  ;;  %v1794_v23 = vpack.c.bf16 %v148_v13, %v142_v12  ;;  %v147_v24 = vld [vmem:[#allocation2 + $0x230] sm:$0xff]  ;;  %v350_v26 = vld [vmem:[#allocation2 + $0x888] sm:$0xff] }
  0xbc   :  { %1567 = vmatprep.subr.bf16.mxu0 %v1566_v38  ;;  %v93_v38 = vld [vmem:[#allocation2 + $0x80] sm:$0xff]  ;;  %v1796_v31 = vpack.c.bf16 %v147_v24, %v141_v22  ;;  %v404_v22 = vld [vmem:[#allocation2 + $0xa38] sm:$0xff]  ;;  %v214_v24 = vld [vmem:[#allocation2 + $0x448] sm:$0xff] }
  0xbe   :  { %1633 = vmatpush1.bf16.msra.mxu1 %v1632_v44  ;;  %v112_v44 = vld [vmem:[#allocation2 + $0x118] sm:$0xff] }
  0xbf   :  { %1569 = vmatpush1.bf16.msra.mxu0 %v1568_v45  ;;  %1635 = vmatprep.subr.bf16.mxu1 %v1634_v46  ;;  %v1652_v45 = vpack.c.bf16 %v289_v37, %v283_v36  ;;  %v1780_v46 = vpack.c.bf16 %v99_v40, %v93_v38  ;;  %v1782_v51 = vpack.c.bf16 %v112_v44, %v106_v43  ;;  %v159_v37 = vld [vmem:[#allocation2 + $0x290] sm:$0xff]  ;;  %v356_v38 = vld [vmem:[#allocation2 + $0x8b8] sm:$0xff]  ;;  %v166_v40 = vld [vmem:[#allocation2 + $0x2c8] sm:$0xff] }
  0xc0   :  { %1571 = vmatprep.subr.bf16.mxu0 %v1570_v50  ;;  %v105_v50 = vld [vmem:[#allocation2 + $0xe0] sm:$0xff]  ;;  %v1798_v36 = vpack.c.bf16 %v160_v28, %v154_v27 }
  0xc2   :  { %1637 = vmatpush1.bf16.msra.mxu1 %v1636_v56  ;;  %v1656_v56 = vpack.c.bf16 %v301_v49, %v295_v48  ;;  %v1802_v48 = vpack.c.bf16 %v172_v41, %v166_v40  ;;  %v171_v49 = vld [vmem:[#allocation2 + $0x2f0] sm:$0xff] }
  0xc3   :  { %1573 = vmatpush1.bf16.msra.mxu0 %v1572_v57  ;;  %1639 = vmatprep.subr.bf16.mxu1 %v1638_v58  ;;  %v1784_v57 = vpack.c.bf16 %v111_v52, %v105_v50  ;;  %v1658_v58 = vpack.c.bf16 %v314_v54, %v308_v53  ;;  %v368_v50 = vld [vmem:[#allocation2 + $0x918] sm:$0xff]  ;;  %v178_v52 = vld [vmem:[#allocation2 + $0x328] sm:$0xff] }
  0xc4   :  { %1575 = vmatprep.subr.bf16.mxu0 %v1574_v62  ;;  %v184_v53 = vld [vmem:[#allocation2 + $0x358] sm:$0xff] }
  0xc5   :  { %v1806_v59 = vpack.c.bf16 %v184_v53, %v178_v52 }
  0xc6   :  { %1641 = vmatpush1.bf16.msra.mxu1 %v1640_v4  ;;  %v1662_v4 = vpack.c.bf16 %v326_v1, %v320_v0  ;;  %v196_v0 = vld [vmem:[#allocation2 + $0x3b8] sm:$0xff] }
  0xc7   :  { %1577 = vmatpush1.bf16.msra.mxu0 %v1576_v5  ;;  %1643 = vmatprep.subr.bf16.mxu1 %v1642_v6  ;;  %v319_v5 = vld [vmem:[#allocation2 + $0x790] sm:$0xff]  ;;  %v325_v6 = vld [vmem:[#allocation2 + $0x7c0] sm:$0xff] }
  0xc8   :  { %1579 = vmatprep.subr.bf16.mxu0 %v1578_v10  ;;  %v332_v10 = vld [vmem:[#allocation2 + $0x7f8] sm:$0xff]  ;;  %v1664_v14 = vpack.c.bf16 %v325_v6, %v319_v5  ;;  %v195_v6 = vld [vmem:[#allocation2 + $0x3b0] sm:$0xff] }
  0xca   :  { %1645 = vmatpush1.bf16.msra.mxu1 %v1644_v18  ;;  %v1666_v18 = vpack.c.bf16 %v338_v11, %v332_v10  ;;  %v208_v10 = vld [vmem:[#allocation2 + $0x418] sm:$0xff] }
  0xcb   :  { %1581 = vmatpush1.bf16.msra.mxu0 %v1580_v20  ;;  %1647 = vmatprep.subr.bf16.mxu1 %v1646_v21  ;;  %v331_v20 = vld [vmem:[#allocation2 + $0x7f0] sm:$0xff]  ;;  %v337_v21 = vld [vmem:[#allocation2 + $0x820] sm:$0xff] }
  0xcc   :  { %1775 = vmatprep.subr.bf16.mxu0 %v1774_v25  ;;  %v344_v25 = vld [vmem:[#allocation2 + $0x858] sm:$0xff]  ;;  %v1668_v30 = vpack.c.bf16 %v337_v21, %v331_v20  ;;  %v1814_v20 = vpack.c.bf16 %v208_v10, %v202_v9  ;;  %v207_v21 = vld [vmem:[#allocation2 + $0x410] sm:$0xff] }
  0xcd   :  { %964 = vmatmul.mubr.f32.vlgmr.msra.gmra.mrb[2].mxu1 %v2221_v17  ;;  %v118_v17 = vld [vmem:[#allocation2 + $0x148] sm:$0xff] }
  0xce   :  { %893 = vmatmul.mubr.f32.vlgmr.msra.gmra.mrb[0].mxu0 %v75_v32  ;;  %1649 = vmatpush1.bf16.msra.mxu1 %v1648_v33  ;;  %v1786_v62 = vpack.c.bf16 %v124_v55, %v118_v17  ;;  %v1670_v32 = vpack.c.bf16 %v350_v26, %v344_v25  ;;  %v343_v33 = vld [vmem:[#allocation2 + $0x850] sm:$0xff]  ;;  %v220_v25 = vld [vmem:[#allocation2 + $0x478] sm:$0xff] }
  0xcf   :  { %1777 = vmatpush1.bf16.msra.mxu0 %v1776_v34  ;;  %1651 = vmatprep.subr.bf16.mxu1 %v1650_v35  ;;  %v349_v34 = vld [vmem:[#allocation2 + $0x880] sm:$0xff] }
  0xd0   :  { %1779 = vmatprep.subr.bf16.mxu0 %v1778_v39  ;;  %1034 = vmatprep.mubr.f32.mxu1 %v2215_v19  ;;  %v136_v19 = vld [vmem:[#allocation2 + $0x1d8] sm:$0xff]  ;;  %v153_v35 = vld [vmem:[#allocation2 + $0x260] sm:$0xff]  ;;  %v362_v39 = vld [vmem:[#allocation2 + $0x8e8] sm:$0xff]  ;;  %v1672_v42 = vpack.c.bf16 %v349_v34, %v343_v33  ;;  %v1818_v33 = vpack.c.bf16 %v220_v25, %v214_v24 }
  0xd1   :  { %1176 = vmatprep.mubr.f32.mxu0 %v2209_v16  ;;  %v1788_v16 = vpack.c.bf16 %v123_v63, %v117_v61  ;;  %v1790_v8 = vpack.c.bf16 %v136_v19, %v130_v2  ;;  %v1800_v43 = vpack.c.bf16 %v159_v37, %v153_v35  ;;  %v1674_v44 = vpack.c.bf16 %v362_v39, %v356_v38  ;;  %v380_v61 = vld [vmem:[#allocation2 + $0x978] sm:$0xff]  ;;  %v190_v63 = vld [vmem:[#allocation2 + $0x388] sm:$0xff]  ;;  %v219_v34 = vld [vmem:[#allocation2 + $0x470] sm:$0xff] }
  0xd2   :  { %1653 = vmatpush1.bf16.msra.mxu1 %v1652_v45  ;;  %v355_v45 = vld [vmem:[#allocation2 + $0x8b0] sm:$0xff]  ;;  %v1810_v5 = vpack.c.bf16 %v196_v0, %v190_v63  ;;  %v416_v35 = vld [vmem:[#allocation2 + $0xa98] sm:$0xff]  ;;  %v226_v37 = vld [vmem:[#allocation2 + $0x4a8] sm:$0xff] }
  0xd3   :  { %1781 = vmatpush1.bf16.msra.mxu0 %v1780_v46  ;;  %1655 = vmatprep.subr.bf16.mxu1 %v1654_v47  ;;  %v361_v46 = vld [vmem:[#allocation2 + $0x8e0] sm:$0xff]  ;;  %v232_v38 = vld [vmem:[#allocation2 + $0x4d8] sm:$0xff] }
  0xd4   :  { %1783 = vmatprep.subr.bf16.mxu0 %v1782_v51  ;;  %v165_v47 = vld [vmem:[#allocation2 + $0x2c0] sm:$0xff]  ;;  %v374_v51 = vld [vmem:[#allocation2 + $0x948] sm:$0xff]  ;;  %v1676_v54 = vpack.c.bf16 %v361_v46, %v355_v45  ;;  %v1822_v45 = vpack.c.bf16 %v232_v38, %v226_v37  ;;  %v231_v46 = vld [vmem:[#allocation2 + $0x4d0] sm:$0xff] }
  0xd5   :  { %v1804_v17 = vpack.c.bf16 %v171_v49, %v165_v47  ;;  %v1678_v55 = vpack.c.bf16 %v374_v51, %v368_v50  ;;  %v428_v47 = vld [vmem:[#allocation2 + $0xaf8] sm:$0xff]  ;;  %v238_v49 = vld [vmem:[#allocation2 + $0x508] sm:$0xff] }
  0xd6   :  { %1657 = vmatpush1.bf16.msra.mxu1 %v1656_v56  ;;  %v367_v56 = vld [vmem:[#allocation2 + $0x910] sm:$0xff]  ;;  %v244_v50 = vld [vmem:[#allocation2 + $0x538] sm:$0xff] }
  0xd7   :  { %1785 = vmatpush1.bf16.msra.mxu0 %v1784_v57  ;;  %1659 = vmatprep.subr.bf16.mxu1 %v1658_v58  ;;  %v373_v57 = vld [vmem:[#allocation2 + $0x940] sm:$0xff] }
  0xd8   :  { %1787 = vmatprep.subr.bf16.mxu0 %v1786_v62  ;;  %v177_v58 = vld [vmem:[#allocation2 + $0x320] sm:$0xff]  ;;  %v386_v62 = vld [vmem:[#allocation2 + $0x9a8] sm:$0xff]  ;;  %v1680_v1 = vpack.c.bf16 %v373_v57, %v367_v56  ;;  %v1826_v56 = vpack.c.bf16 %v244_v50, %v238_v49  ;;  %v243_v57 = vld [vmem:[#allocation2 + $0x530] sm:$0xff] }
  0xd9   :  { %v1808_v2 = vpack.c.bf16 %v183_v60, %v177_v58  ;;  %v1682_v19 = vpack.c.bf16 %v386_v62, %v380_v61  ;;  %v440_v58 = vld [vmem:[#allocation2 + $0xb58] sm:$0xff]  ;;  %v250_v60 = vld [vmem:[#allocation2 + $0x568] sm:$0xff]  ;;  %v1992_v49 = vld [vmem:[%s2288_s0] sm:$0xff] }
  0xda   :  { %1661 = vmatpush1.bf16.msra.mxu1 %v1660_v3  ;;  %v379_v3 = vld [vmem:[#allocation2 + $0x970] sm:$0xff]  ;;  %v256_v61 = vld [vmem:[#allocation2 + $0x598] sm:$0xff] }
  0xdb   :  { %1789 = vmatpush1.bf16.msra.mxu0 %v1788_v16  ;;  %1663 = vmatprep.subr.bf16.mxu1 %v1662_v4  ;;  %v385_v16 = vld [vmem:[#allocation2 + $0x9a0] sm:$0xff] }
  0xdc   :  { %1791 = vmatprep.subr.bf16.mxu0 %v1790_v8  ;;  %v189_v4 = vld [vmem:[#allocation2 + $0x380] sm:$0xff]  ;;  %v398_v8 = vld [vmem:[#allocation2 + $0xa08] sm:$0xff]  ;;  %v1684_v11 = vpack.c.bf16 %v385_v16, %v379_v3  ;;  %v1830_v3 = vpack.c.bf16 %v256_v61, %v250_v60  ;;  %v255_v16 = vld [vmem:[#allocation2 + $0x590] sm:$0xff] }
  0xdd   :  { %v1812_v12 = vpack.c.bf16 %v195_v6, %v189_v4  ;;  %v1686_v13 = vpack.c.bf16 %v398_v8, %v392_v7  ;;  %v452_v4 = vld [vmem:[#allocation2 + $0xbb8] sm:$0xff]  ;;  %v262_v6 = vld [vmem:[#allocation2 + $0x5c8] sm:$0xff] }
  0xde   :  { %1665 = vmatpush1.bf16.msra.mxu1 %v1664_v14  ;;  %v391_v14 = vld [vmem:[#allocation2 + $0x9d0] sm:$0xff]  ;;  %v268_v7 = vld [vmem:[#allocation2 + $0x5f8] sm:$0xff] }
  0xdf   :  { %1793 = vmatpush1.bf16.msra.mxu0 %v1792_v15  ;;  %1667 = vmatprep.subr.bf16.mxu1 %v1666_v18  ;;  %v397_v15 = vld [vmem:[#allocation2 + $0xa00] sm:$0xff]  ;;  %v316_v60 = vld [vmem:[#allocation2 + $0x778] sm:$0xff] }
  0xe0   :  { %1795 = vmatprep.subr.bf16.mxu0 %v1794_v23  ;;  %v201_v18 = vld [vmem:[#allocation2 + $0x3e0] sm:$0xff]  ;;  %v410_v23 = vld [vmem:[#allocation2 + $0xa68] sm:$0xff]  ;;  %v1688_v26 = vpack.c.bf16 %v397_v15, %v391_v14  ;;  %v1834_v14 = vpack.c.bf16 %v268_v7, %v262_v6  ;;  %v267_v15 = vld [vmem:[#allocation2 + $0x5f0] sm:$0xff] }
  0xe1   :  { %v1816_v27 = vpack.c.bf16 %v207_v21, %v201_v18  ;;  %v1690_v28 = vpack.c.bf16 %v410_v23, %v404_v22  ;;  %v464_v18 = vld [vmem:[#allocation2 + $0xc18] sm:$0xff]  ;;  %v274_v21 = vld [vmem:[#allocation2 + $0x628] sm:$0xff] }
  0xe2   :  { %1669 = vmatpush1.bf16.msra.mxu1 %v1668_v30  ;;  %v403_v30 = vld [vmem:[#allocation2 + $0xa30] sm:$0xff]  ;;  %v280_v22 = vld [vmem:[#allocation2 + $0x658] sm:$0xff] }
  0xe3   :  { %1797 = vmatpush1.bf16.msra.mxu0 %v1796_v31  ;;  %1671 = vmatprep.subr.bf16.mxu1 %v1670_v32  ;;  %v409_v31 = vld [vmem:[#allocation2 + $0xa60] sm:$0xff]  ;;  %v1993_v61 = vld [vmem:[%s2288_s0 + $0x18] sm:$0xff] }
  0xe4   :  { %1799 = vmatprep.subr.bf16.mxu0 %v1798_v36  ;;  %v213_v32 = vld [vmem:[#allocation2 + $0x440] sm:$0xff]  ;;  %v422_v36 = vld [vmem:[#allocation2 + $0xac8] sm:$0xff]  ;;  %v1692_v39 = vpack.c.bf16 %v409_v31, %v403_v30  ;;  %v1838_v30 = vpack.c.bf16 %v280_v22, %v274_v21  ;;  %v279_v31 = vld [vmem:[#allocation2 + $0x650] sm:$0xff] }
  0xe5   :  { %v1820_v40 = vpack.c.bf16 %v219_v34, %v213_v32  ;;  %v1694_v41 = vpack.c.bf16 %v422_v36, %v416_v35  ;;  %v476_v32 = vld [vmem:[#allocation2 + $0xc78] sm:$0xff]  ;;  %v286_v34 = vld [vmem:[#allocation2 + $0x688] sm:$0xff] }
  0xe6   :  { %1673 = vmatpush1.bf16.msra.mxu1 %v1672_v42  ;;  %v415_v42 = vld [vmem:[#allocation2 + $0xa90] sm:$0xff]  ;;  %v292_v35 = vld [vmem:[#allocation2 + $0x6b8] sm:$0xff] }
  0xe7   :  { %1801 = vmatpush1.bf16.msra.mxu0 %v1800_v43  ;;  %1675 = vmatprep.subr.bf16.mxu1 %v1674_v44  ;;  %v421_v43 = vld [vmem:[#allocation2 + $0xac0] sm:$0xff]  ;;  %v328_v6 = vld [vmem:[#allocation2 + $0x7d8] sm:$0xff] }
  0xe8   :  { %1803 = vmatprep.subr.bf16.mxu0 %v1802_v48  ;;  %v225_v44 = vld [vmem:[#allocation2 + $0x4a0] sm:$0xff]  ;;  %v434_v48 = vld [vmem:[#allocation2 + $0xb28] sm:$0xff]  ;;  %v1696_v51 = vpack.c.bf16 %v421_v43, %v415_v42  ;;  %v1842_v42 = vpack.c.bf16 %v292_v35, %v286_v34  ;;  %v291_v43 = vld [vmem:[#allocation2 + $0x6b0] sm:$0xff] }
  0xe9   :  { %v1824_v52 = vpack.c.bf16 %v231_v46, %v225_v44  ;;  %v1698_v53 = vpack.c.bf16 %v434_v48, %v428_v47  ;;  %v488_v44 = vld [vmem:[#allocation2 + $0xcd8] sm:$0xff]  ;;  %v2243_v46 = vld [vmem:[%s2288_s0 + $0x10] sm:$0xff]  ;;  %v298_v47 = vld [vmem:[#allocation2 + $0x6e8] sm:$0xff] }
  0xea   :  { %1677 = vmatpush1.bf16.msra.mxu1 %v1676_v54  ;;  %v427_v54 = vld [vmem:[#allocation2 + $0xaf0] sm:$0xff]  ;;  %v304_v48 = vld [vmem:[#allocation2 + $0x718] sm:$0xff] }
  0xeb   :  { %1805 = vmatpush1.bf16.msra.mxu0 %v1804_v17  ;;  %1679 = vmatprep.subr.bf16.mxu1 %v1678_v55  ;;  %v433_v17 = vld [vmem:[#allocation2 + $0xb20] sm:$0xff]  ;;  %v340_v21 = vld [vmem:[#allocation2 + $0x838] sm:$0xff] }
  0xec   :  { %1807 = vmatprep.subr.bf16.mxu0 %v1806_v59  ;;  %v237_v55 = vld [vmem:[#allocation2 + $0x500] sm:$0xff]  ;;  %v446_v59 = vld [vmem:[#allocation2 + $0xb88] sm:$0xff]  ;;  %v1700_v62 = vpack.c.bf16 %v433_v17, %v427_v54  ;;  %v352_v34 = vld [vmem:[#allocation2 + $0x898] sm:$0xff] }
  0xed   :  { %v1828_v63 = vpack.c.bf16 %v243_v57, %v237_v55  ;;  %v1702_v0 = vpack.c.bf16 %v446_v59, %v440_v58  ;;  %v493_v54 = vld [vmem:[#allocation2 + $0xd00] sm:$0xff]  ;;  %v1846_v55 = vpack.c.bf16 %v304_v48, %v298_v47  ;;  %v500_v57 = vld [vmem:[#allocation2 + $0xd38] sm:$0xff]  ;;  %v506_v58 = vld [vmem:[#allocation2 + $0xd68] sm:$0xff] }
  0xee   :  { %1681 = vmatpush1.bf16.msra.mxu1 %v1680_v1  ;;  %v439_v1 = vld [vmem:[#allocation2 + $0xb50] sm:$0xff]  ;;  %v297_v17 = vld [vmem:[#allocation2 + $0x6e0] sm:$0xff]  ;;  %v310_v59 = vld [vmem:[#allocation2 + $0x748] sm:$0xff] }
  0xef   :  { %1809 = vmatpush1.bf16.msra.mxu0 %v1808_v2  ;;  %1683 = vmatprep.subr.bf16.mxu1 %v1682_v19  ;;  %v445_v2 = vld [vmem:[#allocation2 + $0xb80] sm:$0xff]  ;;  %v364_v47 = vld [vmem:[#allocation2 + $0x8f8] sm:$0xff] }
  0xf0   :  { %1811 = vmatprep.subr.bf16.mxu0 %v1810_v5  ;;  %v249_v19 = vld [vmem:[#allocation2 + $0x560] sm:$0xff]  ;;  %v458_v5 = vld [vmem:[#allocation2 + $0xbe8] sm:$0xff]  ;;  %v1704_v8 = vpack.c.bf16 %v445_v2, %v439_v1  ;;  %v499_v1 = vld [vmem:[#allocation2 + $0xd30] sm:$0xff] }
  0xf1   :  { %v1832_v9 = vpack.c.bf16 %v255_v16, %v249_v19  ;;  %v1706_v10 = vpack.c.bf16 %v458_v5, %v452_v4  ;;  %v505_v2 = vld [vmem:[#allocation2 + $0xd60] sm:$0xff]  ;;  %v315_v16 = vld [vmem:[#allocation2 + $0x770] sm:$0xff]  ;;  %v518_v4 = vld [vmem:[#allocation2 + $0xdc8] sm:$0xff] }
  0xf2   :  { %1685 = vmatpush1.bf16.msra.mxu1 %v1684_v11  ;;  %v451_v11 = vld [vmem:[#allocation2 + $0xbb0] sm:$0xff]  ;;  %v309_v19 = vld [vmem:[#allocation2 + $0x740] sm:$0xff]  ;;  %v322_v5 = vld [vmem:[#allocation2 + $0x7a8] sm:$0xff]  ;;  %v1724_v7 = vpack.c.bf16 %v505_v2, %v499_v1 }
  0xf3   :  { %1813 = vmatpush1.bf16.msra.mxu0 %v1812_v12  ;;  %1687 = vmatprep.subr.bf16.mxu1 %v1686_v13  ;;  %v457_v12 = vld [vmem:[#allocation2 + $0xbe0] sm:$0xff]  ;;  %v375_v2 = vld [vmem:[#allocation2 + $0x950] sm:$0xff] }
  0xf4   :  { %1815 = vmatprep.subr.bf16.mxu0 %v1814_v20  ;;  %v261_v13 = vld [vmem:[#allocation2 + $0x5c0] sm:$0xff]  ;;  %v470_v20 = vld [vmem:[#allocation2 + $0xc48] sm:$0xff]  ;;  %v1708_v23 = vpack.c.bf16 %v457_v12, %v451_v11 }
  0xf5   :  { %v1836_v24 = vpack.c.bf16 %v267_v15, %v261_v13  ;;  %v1710_v25 = vpack.c.bf16 %v470_v20, %v464_v18  ;;  %v517_v11 = vld [vmem:[#allocation2 + $0xdc0] sm:$0xff]  ;;  %v1854_v13 = vpack.c.bf16 %v328_v6, %v322_v5  ;;  %v524_v15 = vld [vmem:[#allocation2 + $0xdf8] sm:$0xff]  ;;  %v530_v18 = vld [vmem:[#allocation2 + $0xe28] sm:$0xff] }
  0xf6   :  { %1689 = vmatpush1.bf16.msra.mxu1 %v1688_v26  ;;  %v463_v26 = vld [vmem:[#allocation2 + $0xc10] sm:$0xff]  ;;  %v321_v12 = vld [vmem:[#allocation2 + $0x7a0] sm:$0xff]  ;;  %v334_v20 = vld [vmem:[#allocation2 + $0x808] sm:$0xff] }
  0xf7   :  { %1817 = vmatpush1.bf16.msra.mxu0 %v1816_v27  ;;  %1691 = vmatprep.subr.bf16.mxu1 %v1690_v28  ;;  %v469_v27 = vld [vmem:[#allocation2 + $0xc40] sm:$0xff] }
  0xf8   :  { %1819 = vmatprep.subr.bf16.mxu0 %v1818_v33  ;;  %v273_v28 = vld [vmem:[#allocation2 + $0x620] sm:$0xff]  ;;  %v482_v33 = vld [vmem:[#allocation2 + $0xca8] sm:$0xff]  ;;  %v1712_v36 = vpack.c.bf16 %v469_v27, %v463_v26 }
  0xf9   :  { %v1840_v37 = vpack.c.bf16 %v279_v31, %v273_v28  ;;  %v1714_v38 = vpack.c.bf16 %v482_v33, %v476_v32  ;;  %v529_v26 = vld [vmem:[#allocation2 + $0xe20] sm:$0xff]  ;;  %v1858_v28 = vpack.c.bf16 %v340_v21, %v334_v20  ;;  %v536_v31 = vld [vmem:[#allocation2 + $0xe58] sm:$0xff]  ;;  %v542_v32 = vld [vmem:[#allocation2 + $0xe88] sm:$0xff] }
  0xfa   :  { %1693 = vmatpush1.bf16.msra.mxu1 %v1692_v39  ;;  %v475_v39 = vld [vmem:[#allocation2 + $0xc70] sm:$0xff]  ;;  %v333_v27 = vld [vmem:[#allocation2 + $0x800] sm:$0xff]  ;;  %v346_v33 = vld [vmem:[#allocation2 + $0x868] sm:$0xff] }
  0xfb   :  { %1821 = vmatpush1.bf16.msra.mxu0 %v1820_v40  ;;  %1695 = vmatprep.subr.bf16.mxu1 %v1694_v41  ;;  %v481_v40 = vld [vmem:[#allocation2 + $0xca0] sm:$0xff] }
  0xfc   :  { %1823 = vmatprep.subr.bf16.mxu0 %v1822_v45  ;;  %v285_v41 = vld [vmem:[#allocation2 + $0x680] sm:$0xff]  ;;  %v494_v45 = vld [vmem:[#allocation2 + $0xd08] sm:$0xff]  ;;  %v1716_v50 = vpack.c.bf16 %v481_v40, %v475_v39 }
  0xfd   :  { %v541_v39 = vld [vmem:[#allocation2 + $0xe80] sm:$0xff] }
  0xfe   :  { %1697 = vmatpush1.bf16.msra.mxu1 %v1696_v51  ;;  %v1844_v51 = vpack.c.bf16 %v291_v43, %v285_v41  ;;  %v345_v40 = vld [vmem:[#allocation2 + $0x860] sm:$0xff]  ;;  %v1862_v41 = vpack.c.bf16 %v352_v34, %v346_v33  ;;  %v548_v43 = vld [vmem:[#allocation2 + $0xeb8] sm:$0xff] }
  0xff   :  { %1825 = vmatpush1.bf16.msra.mxu0 %v1824_v52  ;;  %1699 = vmatprep.subr.bf16.mxu1 %v1698_v53  ;;  %v1718_v52 = vpack.c.bf16 %v494_v45, %v488_v44  ;;  %v487_v53 = vld [vmem:[#allocation2 + $0xcd0] sm:$0xff]  ;;  %v554_v44 = vld [vmem:[#allocation2 + $0xee8] sm:$0xff] }
 0x100   :  { %1827 = vmatprep.subr.bf16.mxu0 %v1826_v56  ;;  %v303_v56 = vld [vmem:[#allocation2 + $0x710] sm:$0xff]  ;;  %v358_v45 = vld [vmem:[#allocation2 + $0x8c8] sm:$0xff] }
 0x102   :  { %1701 = vmatpush1.bf16.msra.mxu1 %v1700_v62  ;;  %v1720_v62 = vpack.c.bf16 %v493_v54, %v487_v53  ;;  %v357_v53 = vld [vmem:[#allocation2 + $0x8c0] sm:$0xff]  ;;  %v1866_v54 = vpack.c.bf16 %v364_v47, %v358_v45 }
 0x103   :  { %1829 = vmatpush1.bf16.msra.mxu0 %v1828_v63  ;;  %1703 = vmatprep.subr.bf16.mxu1 %v1702_v0  ;;  %v1848_v63 = vpack.c.bf16 %v303_v56, %v297_v17  ;;  %v1722_v0 = vpack.c.bf16 %v506_v58, %v500_v57  ;;  %v363_v17 = vld [vmem:[#allocation2 + $0x8f0] sm:$0xff]  ;;  %v566_v56 = vld [vmem:[#allocation2 + $0xf48] sm:$0xff]  ;;  %v376_v58 = vld [vmem:[#allocation2 + $0x958] sm:$0xff] }
 0x104   :  { %1831 = vmatprep.subr.bf16.mxu0 %v1830_v3  ;;  %v1850_v3 = vpack.c.bf16 %v316_v60, %v310_v59  ;;  %v370_v57 = vld [vmem:[#allocation2 + $0x928] sm:$0xff]  ;;  %v1868_v60 = vpack.c.bf16 %v363_v17, %v357_v53  ;;  %v620_v53 = vld [vmem:[#allocation2 + $0x10f8] sm:$0xff] }
 0x105   :  { %v1870_v1 = vpack.c.bf16 %v376_v58, %v370_v57  ;;  %v430_v17 = vld [vmem:[#allocation2 + $0xb08] sm:$0xff] }
 0x106   :  { %1705 = vmatpush1.bf16.msra.mxu1 %v1704_v8  ;;  %v1852_v8 = vpack.c.bf16 %v315_v16, %v309_v19  ;;  %v572_v19 = vld [vmem:[#allocation2 + $0xf78] sm:$0xff]  ;;  %v382_v16 = vld [vmem:[#allocation2 + $0x988] sm:$0xff] }
 0x107   :  { %1833 = vmatpush1.bf16.msra.mxu0 %v1832_v9  ;;  %1707 = vmatprep.subr.bf16.mxu1 %v1706_v10  ;;  %v511_v10 = vld [vmem:[#allocation2 + $0xd90] sm:$0xff] }
 0x108   :  { %1835 = vmatprep.subr.bf16.mxu0 %v1834_v14  ;;  %v327_v14 = vld [vmem:[#allocation2 + $0x7d0] sm:$0xff]  ;;  %v1728_v22 = vpack.c.bf16 %v517_v11, %v511_v10 }
 0x109   :  { %v387_v11 = vld [vmem:[#allocation2 + $0x9b0] sm:$0xff] }
 0x10a   :  { %1709 = vmatpush1.bf16.msra.mxu1 %v1708_v23  ;;  %v1856_v23 = vpack.c.bf16 %v327_v14, %v321_v12  ;;  %v584_v12 = vld [vmem:[#allocation2 + $0xfd8] sm:$0xff]  ;;  %v394_v14 = vld [vmem:[#allocation2 + $0x9e8] sm:$0xff] }
 0x10b   :  { %1837 = vmatpush1.bf16.msra.mxu0 %v1836_v24  ;;  %1711 = vmatprep.subr.bf16.mxu1 %v1710_v25  ;;  %v1730_v24 = vpack.c.bf16 %v530_v18, %v524_v15  ;;  %v523_v25 = vld [vmem:[#allocation2 + $0xdf0] sm:$0xff]  ;;  %v400_v15 = vld [vmem:[#allocation2 + $0xa18] sm:$0xff] }
 0x10c   :  { %1839 = vmatprep.subr.bf16.mxu0 %v1838_v30  ;;  %v339_v30 = vld [vmem:[#allocation2 + $0x830] sm:$0xff]  ;;  %v1732_v35 = vpack.c.bf16 %v529_v26, %v523_v25  ;;  %v1878_v25 = vpack.c.bf16 %v400_v15, %v394_v14 }
 0x10d   :  { %1035 = vmatmul.mubr.f32.vlgmr.msra.gmra.mrb[2].mxu1 %v2243_v46  ;;  %v399_v26 = vld [vmem:[#allocation2 + $0xa10] sm:$0xff] }
 0x10e   :  { %1713 = vmatpush1.bf16.msra.mxu1 %v1712_v36  ;;  %1177 = vmatmul.mubr.f32.vlgmr.msra.gmra.mrb[2].mxu0 %v1992_v49  ;;  %v1860_v36 = vpack.c.bf16 %v339_v30, %v333_v27  ;;  %v596_v27 = vld [vmem:[#allocation2 + $0x1038] sm:$0xff]  ;;  %v406_v30 = vld [vmem:[#allocation2 + $0xa48] sm:$0xff] }
 0x10f   :  { %1841 = vmatpush1.bf16.msra.mxu0 %v1840_v37  ;;  %1715 = vmatprep.subr.bf16.mxu1 %v1714_v38  ;;  %v1734_v37 = vpack.c.bf16 %v542_v32, %v536_v31  ;;  %v535_v38 = vld [vmem:[#allocation2 + $0xe50] sm:$0xff]  ;;  %v412_v31 = vld [vmem:[#allocation2 + $0xa78] sm:$0xff] }
 0x110   :  { %1843 = vmatprep.subr.bf16.mxu0 %v1842_v42  ;;  %1105 = vmatprep.mubr.f32.mxu1 %v2231_v29  ;;  %v512_v29 = vld [vmem:[#allocation2 + $0xd98] sm:$0xff]  ;;  %v351_v42 = vld [vmem:[#allocation2 + $0x890] sm:$0xff]  ;;  %v1736_v48 = vpack.c.bf16 %v541_v39, %v535_v38  ;;  %v1882_v38 = vpack.c.bf16 %v412_v31, %v406_v30  ;;  %v465_v30 = vld [vmem:[#allocation2 + $0xc20] sm:$0xff] }
 0x111   :  { %1247 = vmatprep.mubr.f32.mxu0 %v1993_v61  ;;  %v1726_v9 = vpack.c.bf16 %v518_v4, %v512_v29  ;;  %v1864_v49 = vpack.c.bf16 %v351_v42, %v345_v40  ;;  %v388_v29 = vld [vmem:[#allocation2 + $0x9b8] sm:$0xff]  ;;  %v411_v39 = vld [vmem:[#allocation2 + $0xa70] sm:$0xff]  ;;  %v418_v42 = vld [vmem:[#allocation2 + $0xaa8] sm:$0xff] }
 0x112   :  { %1717 = vmatpush1.bf16.msra.mxu1 %v1716_v50  ;;  %v1738_v50 = vpack.c.bf16 %v554_v44, %v548_v43  ;;  %v1874_v10 = vpack.c.bf16 %v388_v29, %v382_v16  ;;  %v608_v40 = vld [vmem:[#allocation2 + $0x1098] sm:$0xff]  ;;  %v471_v31 = vld [vmem:[#allocation2 + $0xc50] sm:$0xff] }
 0x113   :  { %1845 = vmatpush1.bf16.msra.mxu0 %v1844_v51  ;;  %1719 = vmatprep.subr.bf16.mxu1 %v1718_v52  ;;  %v547_v51 = vld [vmem:[#allocation2 + $0xeb0] sm:$0xff]  ;;  %v553_v52 = vld [vmem:[#allocation2 + $0xee0] sm:$0xff]  ;;  %v424_v43 = vld [vmem:[#allocation2 + $0xad8] sm:$0xff] }
 0x114   :  { %1847 = vmatprep.subr.bf16.mxu0 %v1846_v55  ;;  %v560_v55 = vld [vmem:[#allocation2 + $0xf18] sm:$0xff]  ;;  %v1740_v59 = vpack.c.bf16 %v553_v52, %v547_v51  ;;  %v1886_v51 = vpack.c.bf16 %v424_v43, %v418_v42  ;;  %v423_v52 = vld [vmem:[#allocation2 + $0xad0] sm:$0xff]  ;;  %v1995_v42 = vld [vmem:[%s2288_s0 + $0x28] sm:$0xff] }
 0x115   :  { %v1742_v61 = vpack.c.bf16 %v566_v56, %v560_v55  ;;  %v436_v55 = vld [vmem:[#allocation2 + $0xb38] sm:$0xff] }
 0x116   :  { %1721 = vmatpush1.bf16.msra.mxu1 %v1720_v62  ;;  %v559_v62 = vld [vmem:[#allocation2 + $0xf10] sm:$0xff] }
 0x117   :  { %1849 = vmatpush1.bf16.msra.mxu0 %v1848_v63  ;;  %1723 = vmatprep.subr.bf16.mxu1 %v1722_v0  ;;  %v565_v63 = vld [vmem:[#allocation2 + $0xf40] sm:$0xff] }
 0x118   :  { %1851 = vmatprep.subr.bf16.mxu0 %v1850_v3  ;;  %v369_v0 = vld [vmem:[#allocation2 + $0x920] sm:$0xff]  ;;  %v578_v3 = vld [vmem:[#allocation2 + $0xfa8] sm:$0xff]  ;;  %v1744_v4 = vpack.c.bf16 %v565_v63, %v559_v62  ;;  %v1890_v62 = vpack.c.bf16 %v436_v55, %v430_v17  ;;  %v435_v63 = vld [vmem:[#allocation2 + $0xb30] sm:$0xff] }
 0x119   :  { %v1872_v5 = vpack.c.bf16 %v375_v2, %v369_v0  ;;  %v1746_v6 = vpack.c.bf16 %v578_v3, %v572_v19  ;;  %v632_v0 = vld [vmem:[#allocation2 + $0x1158] sm:$0xff]  ;;  %v442_v2 = vld [vmem:[#allocation2 + $0xb68] sm:$0xff]  ;;  %v513_v55 = vld [vmem:[#allocation2 + $0xda0] sm:$0xff] }
 0x11a   :  { %1725 = vmatpush1.bf16.msra.mxu1 %v1724_v7  ;;  %v571_v7 = vld [vmem:[#allocation2 + $0xf70] sm:$0xff]  ;;  %v448_v19 = vld [vmem:[#allocation2 + $0xb98] sm:$0xff] }
 0x11b   :  { %1853 = vmatpush1.bf16.msra.mxu0 %v1852_v8  ;;  %1727 = vmatprep.subr.bf16.mxu1 %v1726_v9  ;;  %v577_v8 = vld [vmem:[#allocation2 + $0xfa0] sm:$0xff] }
 0x11c   :  { %1855 = vmatprep.subr.bf16.mxu0 %v1854_v13  ;;  %v381_v9 = vld [vmem:[#allocation2 + $0x980] sm:$0xff]  ;;  %v590_v13 = vld [vmem:[#allocation2 + $0x1008] sm:$0xff]  ;;  %v1748_v18 = vpack.c.bf16 %v577_v8, %v571_v7  ;;  %v1894_v7 = vpack.c.bf16 %v448_v19, %v442_v2  ;;  %v447_v8 = vld [vmem:[#allocation2 + $0xb90] sm:$0xff] }
 0x11d   :  { %v1876_v20 = vpack.c.bf16 %v387_v11, %v381_v9  ;;  %v1750_v21 = vpack.c.bf16 %v590_v13, %v584_v12  ;;  %v644_v9 = vld [vmem:[#allocation2 + $0x11b8] sm:$0xff]  ;;  %v454_v11 = vld [vmem:[#allocation2 + $0xbc8] sm:$0xff]  ;;  %v537_v19 = vld [vmem:[#allocation2 + $0xe60] sm:$0xff] }
 0x11e   :  { %1729 = vmatpush1.bf16.msra.mxu1 %v1728_v22  ;;  %v583_v22 = vld [vmem:[#allocation2 + $0xfd0] sm:$0xff]  ;;  %v460_v12 = vld [vmem:[#allocation2 + $0xbf8] sm:$0xff] }
 0x11f   :  { %1857 = vmatpush1.bf16.msra.mxu0 %v1856_v23  ;;  %1731 = vmatprep.subr.bf16.mxu1 %v1730_v24  ;;  %v589_v23 = vld [vmem:[#allocation2 + $0x1000] sm:$0xff] }
 0x120   :  { %1859 = vmatprep.subr.bf16.mxu0 %v1858_v28  ;;  %v393_v24 = vld [vmem:[#allocation2 + $0x9e0] sm:$0xff]  ;;  %v602_v28 = vld [vmem:[#allocation2 + $0x1068] sm:$0xff]  ;;  %v1752_v32 = vpack.c.bf16 %v589_v23, %v583_v22  ;;  %v459_v23 = vld [vmem:[#allocation2 + $0xbf0] sm:$0xff] }
 0x121   :  { %v1880_v33 = vpack.c.bf16 %v399_v26, %v393_v24  ;;  %v1754_v34 = vpack.c.bf16 %v602_v28, %v596_v27  ;;  %v453_v22 = vld [vmem:[#allocation2 + $0xbc0] sm:$0xff]  ;;  %v466_v24 = vld [vmem:[#allocation2 + $0xc28] sm:$0xff] }
 0x122   :  { %1733 = vmatpush1.bf16.msra.mxu1 %v1732_v35  ;;  %v595_v35 = vld [vmem:[#allocation2 + $0x1030] sm:$0xff]  ;;  %v1900_v27 = vpack.c.bf16 %v459_v23, %v453_v22  ;;  %v573_v23 = vld [vmem:[#allocation2 + $0xf80] sm:$0xff] }
 0x123   :  { %1861 = vmatpush1.bf16.msra.mxu0 %v1860_v36  ;;  %1735 = vmatprep.subr.bf16.mxu1 %v1734_v37  ;;  %v601_v36 = vld [vmem:[#allocation2 + $0x1060] sm:$0xff] }
 0x124   :  { %1863 = vmatprep.subr.bf16.mxu0 %v1862_v41  ;;  %v405_v37 = vld [vmem:[#allocation2 + $0xa40] sm:$0xff]  ;;  %v614_v41 = vld [vmem:[#allocation2 + $0x10c8] sm:$0xff]  ;;  %v1756_v44 = vpack.c.bf16 %v601_v36, %v595_v35 }
 0x125   :  { %v1884_v45 = vpack.c.bf16 %v411_v39, %v405_v37  ;;  %v1758_v47 = vpack.c.bf16 %v614_v41, %v608_v40  ;;  %v477_v36 = vld [vmem:[#allocation2 + $0xc80] sm:$0xff]  ;;  %v483_v37 = vld [vmem:[#allocation2 + $0xcb0] sm:$0xff]  ;;  %v490_v39 = vld [vmem:[#allocation2 + $0xce8] sm:$0xff] }
 0x126   :  { %1737 = vmatpush1.bf16.msra.mxu1 %v1736_v48  ;;  %v607_v48 = vld [vmem:[#allocation2 + $0x1090] sm:$0xff]  ;;  %v496_v40 = vld [vmem:[#allocation2 + $0xd18] sm:$0xff]  ;;  %v1908_v41 = vpack.c.bf16 %v483_v37, %v477_v36  ;;  %v597_v36 = vld [vmem:[#allocation2 + $0x1040] sm:$0xff] }
 0x127   :  { %1865 = vmatpush1.bf16.msra.mxu0 %v1864_v49  ;;  %1739 = vmatprep.subr.bf16.mxu1 %v1738_v50  ;;  %v613_v49 = vld [vmem:[#allocation2 + $0x10c0] sm:$0xff]  ;;  %v1910_v43 = vpack.c.bf16 %v496_v40, %v490_v39  ;;  %v603_v37 = vld [vmem:[#allocation2 + $0x1070] sm:$0xff]  ;;  %v610_v39 = vld [vmem:[#allocation2 + $0x10a8] sm:$0xff] }
 0x128   :  { %1867 = vmatprep.subr.bf16.mxu0 %v1866_v54  ;;  %v417_v50 = vld [vmem:[#allocation2 + $0xaa0] sm:$0xff]  ;;  %v626_v54 = vld [vmem:[#allocation2 + $0x1128] sm:$0xff]  ;;  %v1760_v56 = vpack.c.bf16 %v613_v49, %v607_v48  ;;  %v508_v48 = vld [vmem:[#allocation2 + $0xd78] sm:$0xff] }
 0x129   :  { %v1888_v57 = vpack.c.bf16 %v423_v52, %v417_v50  ;;  %v1762_v58 = vpack.c.bf16 %v626_v54, %v620_v53  ;;  %v507_v52 = vld [vmem:[#allocation2 + $0xd70] sm:$0xff]  ;;  %v520_v53 = vld [vmem:[#allocation2 + $0xdd8] sm:$0xff] }
 0x12a   :  { %1741 = vmatpush1.bf16.msra.mxu1 %v1740_v59  ;;  %v619_v59 = vld [vmem:[#allocation2 + $0x10f0] sm:$0xff]  ;;  %v616_v40 = vld [vmem:[#allocation2 + $0x10d8] sm:$0xff] }
 0x12b   :  { %1869 = vmatpush1.bf16.msra.mxu0 %v1868_v60  ;;  %1743 = vmatprep.subr.bf16.mxu1 %v1742_v61  ;;  %v625_v60 = vld [vmem:[#allocation2 + $0x1120] sm:$0xff] }
 0x12c   :  { %1871 = vmatprep.subr.bf16.mxu0 %v1870_v1  ;;  %v429_v61 = vld [vmem:[#allocation2 + $0xb00] sm:$0xff]  ;;  %v638_v1 = vld [vmem:[#allocation2 + $0x1188] sm:$0xff]  ;;  %v1764_v3 = vpack.c.bf16 %v625_v60, %v619_v59 }
 0x12d   :  { %v1892_v16 = vpack.c.bf16 %v435_v63, %v429_v61  ;;  %v1766_v29 = vpack.c.bf16 %v638_v1, %v632_v0  ;;  %v525_v61 = vld [vmem:[#allocation2 + $0xe00] sm:$0xff]  ;;  %v538_v63 = vld [vmem:[#allocation2 + $0xe68] sm:$0xff]  ;;  %v544_v0 = vld [vmem:[#allocation2 + $0xe98] sm:$0xff] }
 0x12e   :  { %1745 = vmatpush1.bf16.msra.mxu1 %v1744_v4  ;;  %v631_v4 = vld [vmem:[#allocation2 + $0x1150] sm:$0xff]  ;;  %v1926_v2 = vpack.c.bf16 %v544_v0, %v538_v63  ;;  %v656_v63 = vlaneseq }
 0x12f   :  { %1873 = vmatpush1.bf16.msra.mxu0 %v1872_v5  ;;  %1747 = vmatprep.subr.bf16.mxu1 %v1746_v6  ;;  %v637_v5 = vld [vmem:[#allocation2 + $0x1180] sm:$0xff] }
 0x130   :  { %1875 = vmatprep.subr.bf16.mxu0 %v1874_v10  ;;  %v441_v6 = vld [vmem:[#allocation2 + $0xb60] sm:$0xff]  ;;  %v650_v10 = vld [vmem:[#allocation2 + $0x11e8] sm:$0xff]  ;;  %v1768_v13 = vpack.c.bf16 %v637_v5, %v631_v4  ;;  %v556_v4 = vld [vmem:[#allocation2 + $0xef8] sm:$0xff]  ;;  %v657_v0 = vshrl.u32 %v656_v63, 7 }
 0x131   :  { %v1896_v14 = vpack.c.bf16 %v447_v8, %v441_v6  ;;  %v1770_v15 = vpack.c.bf16 %v650_v10, %v644_v9  ;;  %v549_v8 = vld [vmem:[#allocation2 + $0xec0] sm:$0xff]  ;;  %v555_v9 = vld [vmem:[#allocation2 + $0xef0] sm:$0xff]  ;;  %v562_v10 = vld [vmem:[#allocation2 + $0xf28] sm:$0xff] }
 0x132   :  { %1749 = vmatpush1.bf16.msra.mxu1 %v1748_v18  ;;  %v643_v18 = vld [vmem:[#allocation2 + $0x11b0] sm:$0xff]  ;;  %vm1327_vm0 = vcmp.eq.s32.totalorder %v657_v0, 0 }
 0x133   :  { %1877 = vmatpush1.bf16.msra.mxu0 %v1876_v20  ;;  %1751 = vmatprep.subr.bf16.mxu1 %v1750_v21  ;;  %v649_v20 = vld [vmem:[#allocation2 + $0x11e0] sm:$0xff]  ;;  %v1898_v21 = vpack.c.bf16 %v460_v12, %v454_v11  ;;  %v568_v11 = vld [vmem:[#allocation2 + $0xf58] sm:$0xff]  ;;  %v1932_v12 = vpack.c.bf16 %v555_v9, %v549_v8 }
 0x134   :  { %1879 = vmatprep.subr.bf16.mxu0 %v1878_v25  ;;  %v472_v25 = vld [vmem:[#allocation2 + $0xc58] sm:$0xff]  ;;  %v1772_v26 = vpack.c.bf16 %v649_v20, %v643_v18  ;;  %v574_v18 = vld [vmem:[#allocation2 + $0xf88] sm:$0xff] }
 0x135   :  { %v1902_v28 = vpack.c.bf16 %v472_v25, %v466_v24  ;;  %v580_v20 = vld [vmem:[#allocation2 + $0xfb8] sm:$0xff]  ;;  %v579_v24 = vld [vmem:[#allocation2 + $0xfb0] sm:$0xff]  ;;  %v586_v25 = vld [vmem:[#allocation2 + $0xfe8] sm:$0xff] }
 0x136   :  { %1753 = vmatpush1.bf16.msra.mxu1 %v1752_v32  ;;  %v478_v32 = vld [vmem:[#allocation2 + $0xc88] sm:$0xff]  ;;  %v1938_v22 = vpack.c.bf16 %v580_v20, %v574_v18 }
 0x137   :  { %1881 = vmatpush1.bf16.msra.mxu0 %v1880_v33  ;;  %1755 = vmatprep.subr.bf16.mxu1 %v1754_v34  ;;  %v484_v33 = vld [vmem:[#allocation2 + $0xcb8] sm:$0xff]  ;;  %v1904_v34 = vpack.c.bf16 %v471_v31, %v465_v30  ;;  %v585_v30 = vld [vmem:[#allocation2 + $0xfe0] sm:$0xff]  ;;  %v591_v31 = vld [vmem:[#allocation2 + $0x1010] sm:$0xff] }
 0x138   :  { %1883 = vmatprep.subr.bf16.mxu0 %v1882_v38  ;;  %v1906_v35 = vpack.c.bf16 %v484_v33, %v478_v32  ;;  %v2256_v38 = vld [vmem:[%s2288_s0 + $0x20] sm:$0xff]  ;;  %v598_v32 = vld [vmem:[#allocation2 + $0x1048] sm:$0xff]  ;;  %v604_v33 = vld [vmem:[#allocation2 + $0x1078] sm:$0xff]  ;;  %s2120_s0 = smov [#allocation10]  }
 0x139   :  { %s1379_s9 = sshll.u32 %s2120_s0, 4  ;;  %s1380_s9 = int_to_ptr.vmem [resolvable:$true] %s1379_s9 }
 0x13a   :  { %1757 = vmatpush1.bf16.msra.mxu1 %v1756_v44  ;;  %v489_v44 = vld [vmem:[#allocation2 + $0xce0] sm:$0xff]  ;;  %s2084_s10 = scalar_lea.vmem %s1380_s9, 768  ;;  %p2089_p5 = scmp.lt.s32.totalorder %s1380_s9, %s1380_s9 }
 0x13b   :  { %1885 = vmatpush1.bf16.msra.mxu0 %v1884_v45  ;;  %1759 = vmatprep.subr.bf16.mxu1 %v1758_v47  ;;  %v495_v45 = vld [vmem:[#allocation2 + $0xd10] sm:$0xff]  ;;  %v502_v47 = vld [vmem:[#allocation2 + $0xd48] sm:$0xff]  ;;  %p2085_p4 = scmp.ne.s32.totalorder %s1380_s9, %s2084_s10  ;;  %p2090_p6 = scmp.lt.s32.totalorder %s2084_s10, %s2084_s10 }
 0x13c   :  { %1887 = vmatprep.subr.bf16.mxu0 %v1886_v51  ;;  %v1912_v49 = vpack.c.bf16 %v495_v45, %v489_v44  ;;  %v1914_v50 = vpack.c.bf16 %v508_v48, %v502_v47  ;;  %v501_v51 = vld [vmem:[#allocation2 + $0xd40] sm:$0xff]  ;;  %v615_v44 = vld [vmem:[#allocation2 + $0x10d0] sm:$0xff]  ;;  %v622_v45 = vld [vmem:[#allocation2 + $0x1108] sm:$0xff] }
 0x13d   :  { %v1916_v54 = vpack.c.bf16 %v507_v52, %v501_v51  ;;  %v628_v47 = vld [vmem:[#allocation2 + $0x1138] sm:$0xff]  ;;  %v627_v51 = vld [vmem:[#allocation2 + $0x1130] sm:$0xff]  ;;  %v634_v52 = vld [vmem:[#allocation2 + $0x1168] sm:$0xff]  ;;  %p2091_p7 = por %p2090_p6, %p2089_p5 }
 0x13e   :  { %1761 = vmatpush1.bf16.msra.mxu1 %v1760_v56  ;;  %v519_v56 = vld [vmem:[#allocation2 + $0xdd0] sm:$0xff] }
 0x13f   :  { %1889 = vmatpush1.bf16.msra.mxu0 %v1888_v57  ;;  %1763 = vmatprep.subr.bf16.mxu1 %v1762_v58  ;;  %v526_v57 = vld [vmem:[#allocation2 + $0xe08] sm:$0xff]  ;;  %v532_v58 = vld [vmem:[#allocation2 + $0xe38] sm:$0xff]  ;;  %v1920_v59 = vpack.c.bf16 %v519_v56, %v513_v55  ;;  %v639_v55 = vld [vmem:[#allocation2 + $0x1190] sm:$0xff]  ;;  %p2092_p8 = pnand %p2091_p7, %p2085_p4 }
 0x140   :  { %1891 = vmatprep.subr.bf16.mxu0 %v1890_v62  ;;  %v1922_v60 = vpack.c.bf16 %v532_v58, %v526_v57  ;;  %v531_v62 = vld [vmem:[#allocation2 + $0xe30] sm:$0xff]  ;;  %v646_v56 = vld [vmem:[#allocation2 + $0x11c8] sm:$0xff]  ;;  %v652_v57 = vld [vmem:[#allocation2 + $0x11f8] sm:$0xff] }
 0x141   :  { %v1924_v1 = vpack.c.bf16 %v531_v62, %v525_v61  ;;  %v651_v61 = vld [vmem:[#allocation2 + $0x11f0] sm:$0xff] }
 0x142   :  { %1765 = vmatpush1.bf16.msra.mxu1 %v1764_v3  ;;  %v543_v3 = vld [vmem:[#allocation2 + $0xe90] sm:$0xff] }
 0x143   :  { %1893 = vmatpush1.bf16.msra.mxu0 %v1892_v16  ;;  %1767 = vmatprep.subr.bf16.mxu1 %v1766_v29  ;;  %v550_v29 = vld [vmem:[#allocation2 + $0xec8] sm:$0xff]  ;;  %v1928_v6 = vpack.c.bf16 %v543_v3, %v537_v19  ;;  %v658_v3 = vsub.s32 0, %v657_v0 }
 0x144   :  { %1895 = vmatprep.subr.bf16.mxu0 %v1894_v7  ;;  %v1930_v7 = vpack.c.bf16 %v556_v4, %v550_v29  ;;  %v662_v29 = vsub.s32 1, %v657_v0  ;;  %v1328_v4 = vld [vmem:[#allocation7] sm:$0x3f] }
 0x146   :  { %1769 = vmatpush1.bf16.msra.mxu1 %v1768_v13  ;;  %v1934_v13 = vpack.c.bf16 %v568_v11, %v562_v10 }
 0x147   :  { %1897 = vmatpush1.bf16.msra.mxu0 %v1896_v14  ;;  %1771 = vmatprep.subr.bf16.mxu1 %v1770_v15  ;;  %v561_v14 = vld [vmem:[#allocation2 + $0xf20] sm:$0xff]  ;;  %v567_v15 = vld [vmem:[#allocation2 + $0xf50] sm:$0xff] }
 0x148   :  { %1899 = vmatprep.subr.bf16.mxu0 %v1898_v21  ;;  %v1936_v21 = vpack.c.bf16 %v567_v15, %v561_v14 }
 0x14a   :  { %1773 = vmatpush1.bf16.msra.mxu1 %v1772_v26  ;;  %v592_v26 = vld [vmem:[#allocation2 + $0x1018] sm:$0xff] }
 0x14b   :  { %1901 = vmatpush1.bf16.msra.mxu0 %v1900_v27  ;;  %v1940_v27 = vpack.c.bf16 %v579_v24, %v573_v23 }
 0x14c   :  { %1903 = vmatprep.subr.bf16.mxu0 %v1902_v28  ;;  %v1942_v28 = vpack.c.bf16 %v592_v26, %v586_v25 }
 0x14d   :  { %1106 = vmatmul.mubr.f32.vlgmr.msra.gmra.mrb[2].mxu1 %v2256_v38 }
 0x14e   :  { %1248 = vmatmul.mubr.f32.vlgmr.msra.gmra.mrb[2].mxu0 %v2243_v46  ;;  %v514_v46 = vld [vmem:[#allocation2 + $0xda8] sm:$0xff] }
 0x14f   :  { %1905 = vmatpush1.bf16.msra.mxu0 %v1904_v34  ;;  %1318 = vmatprep.mubr.f32.mxu0 %v1995_v42  ;;  %v1918_v17 = vpack.c.bf16 %v520_v53, %v514_v46  ;;  %v1944_v34 = vpack.c.bf16 %v591_v31, %v585_v30  ;;  %v1950_v42 = vpack.c.bf16 %v616_v40, %v610_v39  ;;  %v640_v46 = vld [vmem:[#allocation2 + $0x1198] sm:$0xff] }
 0x150   :  { %1907 = vmatprep.subr.bf16.mxu0 %v1906_v35  ;;  %v1946_v35 = vpack.c.bf16 %v604_v33, %v598_v32  ;;  %v674_v32 = vsub.s32 4, %v657_v0  ;;  %v678_v33 = vsub.s32 5, %v657_v0 }
 0x153   :  { %1909 = vmatpush1.bf16.msra.mxu0 %v1908_v41  ;;  %v1948_v41 = vpack.c.bf16 %v603_v37, %v597_v36 }
 0x154   :  { %1911 = vmatprep.subr.bf16.mxu0 %v1910_v43  ;;  %v609_v43 = vld [vmem:[#allocation2 + $0x10a0] sm:$0xff] }
 0x155   :  { %v1952_v48 = vpack.c.bf16 %v615_v44, %v609_v43 }
 0x157   :  { %1913 = vmatpush1.bf16.msra.mxu0 %v1912_v49  ;;  %v1954_v49 = vpack.c.bf16 %v628_v47, %v622_v45 }
 0x158   :  { %1915 = vmatprep.subr.bf16.mxu0 %v1914_v50  ;;  %v621_v50 = vld [vmem:[#allocation2 + $0x1100] sm:$0xff] }
 0x159   :  { %v1956_v53 = vpack.c.bf16 %v627_v51, %v621_v50 }
 0x15b   :  { %1917 = vmatpush1.bf16.msra.mxu0 %v1916_v54  ;;  %v1958_v54 = vpack.c.bf16 %v640_v46, %v634_v52 }
 0x15c   :  { %1919 = vmatprep.subr.bf16.mxu0 %v1918_v17  ;;  %v633_v17 = vld [vmem:[#allocation2 + $0x1160] sm:$0xff] }
 0x15d   :  { %v1960_v58 = vpack.c.bf16 %v639_v55, %v633_v17 }
 0x15f   :  { %1921 = vmatpush1.bf16.msra.mxu0 %v1920_v59  ;;  %v1962_v59 = vpack.c.bf16 %v652_v57, %v646_v56 }
 0x160   :  { %1923 = vmatprep.subr.bf16.mxu0 %v1922_v60  ;;  %v2263_v16 = vpop.f32.mrb[0].mxu1  ;;  %v645_v60 = vld [vmem:[#allocation2 + $0x11c0] sm:$0xff] }
 0x161   :  { %v2265_v5 = vpop.f32.mrb[1].mxu1  ;;  %v1964_v62 = vpack.c.bf16 %v651_v61, %v645_v60 }
 0x163   :  { %1925 = vmatpush1.bf16.msra.mxu0 %v1924_v1  ;;  %v70_v1 = vld [vmem:[#allocation8] sm:$0x3f] }
 0x164   :  { %1927 = vmatprep.subr.bf16.mxu0 %v1926_v2  ;;  %v653_v2 = vld [vmem:[#allocation5] sm:$0x3f]  ;;  %v1329_v8 = vadd.f32 %v1328_v4, %v70_v1 }
 0x165   :  { %v654_v19 = vadd.f32 %v653_v2, %v70_v1 }
 0x166   :  { %v1334_v11 = vrot.slane %v1329_v8, %v658_v3  ;;  %v1350_v36 = vrot.slane %v1329_v8, %v674_v32  ;;  %v1354_v39 = vrot.slane %v1329_v8, %v678_v33 }
 0x167   :  { %1929 = vmatpush1.bf16.msra.mxu0 %v1928_v6  ;;  %v659_v6 = vrot.slane %v654_v19, %v658_v3 }
 0x168   :  { %1931 = vmatprep.subr.bf16.mxu0 %v1930_v7  ;;  %v663_v7 = vrot.slane %v654_v19, %v662_v29 }
 0x169   :  { %v753_v9 = vadd.f32 %v2263_v16, %v659_v6 }
 0x16a   :  { %v755_v10 = vadd.f32 %v2265_v5, %v663_v7 }
 0x16b   :  { %1933 = vmatpush1.bf16.msra.mxu0 %v1932_v12  ;;  %v1338_v12 = vrot.slane %v1329_v8, %v662_v29 }
 0x16c   :  { %1935 = vmatprep.subr.bf16.mxu0 %v1934_v13 }
 0x16f   :  { %1937 = vmatpush1.bf16.msra.mxu0 %v1936_v21  ;;  %v666_v21 = vsub.s32 2, %v657_v0 }
 0x170   :  { %1939 = vmatprep.subr.bf16.mxu0 %v1938_v22  ;;  %v670_v22 = vsub.s32 3, %v657_v0 }
 0x171   :  { %v667_v23 = vrot.slane %v654_v19, %v666_v21  ;;  %v1342_v16 = vrot.slane %v1329_v8, %v666_v21 }
 0x172   :  { %v671_v24 = vrot.slane %v654_v19, %v670_v22  ;;  %v1346_v5 = vrot.slane %v1329_v8, %v670_v22 }
 0x173   :  { %1941 = vmatpush1.bf16.msra.mxu0 %v1940_v27 }
 0x174   :  { %1943 = vmatprep.subr.bf16.mxu0 %v1942_v28 }
 0x177   :  { %1945 = vmatpush1.bf16.msra.mxu0 %v1944_v34  ;;  %v675_v34 = vrot.slane %v654_v19, %v674_v32 }
 0x178   :  { %1947 = vmatprep.subr.bf16.mxu0 %v1946_v35  ;;  %v679_v35 = vrot.slane %v654_v19, %v678_v33 }
 0x17b   :  { %1949 = vmatpush1.bf16.msra.mxu0 %v1948_v41 }
 0x17c   :  { %1951 = vmatprep.subr.bf16.mxu0 %v1950_v42 }
 0x17f   :  { %1953 = vmatpush1.bf16.msra.mxu0 %v1952_v48 }
 0x180   :  { %1955 = vmatprep.subr.bf16.mxu0 %v1954_v49 }
 0x183   :  { %1957 = vmatpush1.bf16.msra.mxu0 %v1956_v53 }
 0x184   :  { %1959 = vmatprep.subr.bf16.mxu0 %v1958_v54 }
 0x187   :  { %1961 = vmatpush1.bf16.msra.mxu0 %v1960_v58 }
 0x188   :  { %1963 = vmatprep.subr.bf16.mxu0 %v1962_v59 }
 0x18b   :  { %1965 = vmatpush1.bf16.msra.mxu0 %v1964_v62 }
 0x18e   :  { %1319 = vmatmul.mubr.f32.vlgmr.msra.gmra.mrb[2].mxu0 %v2256_v38 }
 0x1a1   :  { %v894_v13 = vpop.f32.mrb[0].mxu0 }
 0x1a2   :  { %v1967_v38 = vadd.f32 %v894_v13, %v753_v9  ;;  %v896_v14 = vpop.f32.mrb[1].mxu0 }
 0x1a3   :  { %v1969_v15 = vadd.f32 %v896_v14, %v755_v10 }
 0x1a4   :  { %v1361_v18 = vsel %vm1327_vm0, %v1334_v11, %v1967_v38 }
 0x1a5   :  { %1367 = vst [vmem:[#allocation10] sm:$0xff] %v1361_v18  ;;  %v1362_v20 = vsel %vm1327_vm0, %v1338_v12, %v1969_v15 }
 0x1a6   :  { %1368 = vst [vmem:[#allocation10 + $0x8] sm:$0xff] %v1362_v20 }
 0x220   :  { %v1107_v25 = vpop.f32.mrb[2].mxu1 }
 0x221   :  { %v1970_v26 = vadd.f32 %v1107_v25, %v667_v23  ;;  %v1109_v27 = vpop.f32.mrb[3].mxu1 }
 0x222   :  { %v1971_v28 = vadd.f32 %v1109_v27, %v671_v24 }
 0x223   :  { %v1363_v30 = vsel %vm1327_vm0, %v1342_v16, %v1970_v26 }
 0x224   :  { %1369 = vst [vmem:[#allocation10 + $0x10] sm:$0xff] %v1363_v30  ;;  %v1364_v31 = vsel %vm1327_vm0, %v1346_v5, %v1971_v28 }
 0x225   :  { %1370 = vst [vmem:[#allocation10 + $0x18] sm:$0xff] %v1364_v31 }
 0x261   :  { %v1320_v37 = vpop.f32.mrb[2].mxu0 }
 0x262   :  { %v1972_v40 = vadd.f32 %v1320_v37, %v675_v34  ;;  %v1322_v41 = vpop.f32.mrb[3].mxu0 }
 0x263   :  { %v1973_v42 = vadd.f32 %v1322_v41, %v679_v35 }
 0x264   :  { %v1365_v43 = vsel %vm1327_vm0, %v1350_v36, %v1972_v40 }
 0x265   :  { %1371 = vst [vmem:[#allocation10 + $0x20] sm:$0xff] %v1365_v43  ;;  %v1366_v44 = vsel %vm1327_vm0, %v1354_v39, %v1973_v42 }
 0x266   :  { %1372 = vst [vmem:[#allocation10 + $0x28] sm:$0xff] %v1366_v44 }
 0x267   :  { %2095 = shalt.err (!%p2092_p8)
}
 0x268   :  { %s2096_s13 = scalar_lea.hbm %s2293_s5, 768 }
 0x269   :  { %p2097_p9 = scmp.ne.s32.totalorder %s2293_s5, %s2096_s13  ;;  %p2100_p10 = scmp.lt.u32.totalorder %s2096_s13, %s2293_s5 }
 0x26b   :  { %p2102_p11 = pnand %p2100_p10, %p2097_p9 }
 0x26d   :  { %2105 = shalt.err (!%p2102_p11)
}
 0x26e   :  { %1382 = dma.vmem_to_hbm [thread:$0]  %s1380_s9, 768, %s2293_s5, [#allocation4]  }
 0x26f   :  { %2112 = dma.done.wait [#allocation4], 768  }
 0x270   :  { %2113 = vsyncadd [#allocation4], 4294966528 }
 0x271   :  { %1386 = vsyncpa [#allocation3], 1 }
 0x272   :  { %1387 = vsyncpa [#allocation6], 1 }
 0x273   :  { %1388 = vsyncpa [#allocation9], 1 }
 0x274   :  { %1389 = vsyncpa [#allocation4], 1 }

</bundles_post_ra>
